<compile_context>
chip_gen: v6e
topology: v6e:2x2x1
jax: 0.10.0
libtpu: 0.0.40
codegen_flags: <defaults>
</compile_context>

<pallas_src>
import functools
import math

import jax
import jax.numpy as jnp
from jax import lax
from jax.experimental import pallas as pl
from jax.experimental.pallas import tpu as pltpu


def _round_up(n, m):
    return ((n + m - 1) // m) * m


def _gelu(x, approximate):
    if approximate:
        # tanh approximation -> EUP slot (free under the MXU)
        return jax.nn.gelu(x, approximate=True)
    # PyTorch F.gelu default (approximate='none'): 0.5*x*(1+erf(x/sqrt(2)))
    return 0.5 * x * (1.0 + lax.erf(x * (1.0 / math.sqrt(2.0))))


def _edm_kernel(sigma_ref, x_ref, w1h_ref, b1h_ref, w1g_ref, b1g_ref,
                w2_ref, b2_ref, o_ref, acc_ref, *,
                sigma_data, compute_dtype, approx_gelu):
    # grid = (rows M tiles [parallel], hidden tiles [arbitrary/reduction])
    k = pl.program_id(1)

    @pl.when(k == 0)
    def _init():
        acc_ref[...] = jnp.zeros_like(acc_ref)

    x = x_ref[...].astype(jnp.float32)            # [TM, Cp] (resident across k)
    sig = sigma_ref[...].astype(jnp.float32)      # [TM, 1] per-row sigma
    sd2 = sigma_data * sigma_data
    denom = sig * sig + sd2
    inv_sqrt = lax.rsqrt(denom)

    # c_in * x -> model input (matmul operands in compute_dtype, f32 accumulation)
    x_in = (inv_sqrt * x).astype(compute_dtype)

    # GEGLU projection split into hidden / gate halves (no [TM, 8C] intermediate,
    # no in-kernel slicing across tile boundaries).
    h = jnp.dot(x_in, w1h_ref[...], preferred_element_type=jnp.float32) + b1h_ref[...]
    g = jnp.dot(x_in, w1g_ref[...], preferred_element_type=jnp.float32) + b1g_ref[...]
    y = (h * _gelu(g, approx_gelu)).astype(compute_dtype)     # [TM, TH]

    acc_ref[...] += jnp.dot(y, w2_ref[...], preferred_element_type=jnp.float32)

    @pl.when(k == pl.num_programs(1) - 1)
    def _finalize():
        c_skip = sd2 / denom
        c_out = sig * sigma_data * inv_sqrt
        f_x = acc_ref[...] + b2_ref[...]          # bias added exactly once
        o_ref[...] = (c_skip * x + c_out * f_x).astype(o_ref.dtype)


def edm_precond_forward(x, sigma, params, *, sigma_data=0.5,
                        compute_dtype=jnp.bfloat16, approx_gelu=False, tm=256):
    """EDM preconditioned forward. x: [B, C, H, W], sigma: [B]."""
    w1h, b1h, w1g, b1g, w2, b2 = params
    B, C, H, W = x.shape
    Hd = w2.shape[0]                              # hidden width of the stand-in (4*C)

    x = x.astype(jnp.float32)
    sigma = sigma.astype(jnp.float32).reshape(-1)
    # Conditioning the real UNet would consume (kept for parity with the module).
    _c_noise = jnp.log(sigma) / 4.0               # noqa: F841  TODO(synk): unused by stand-in

    # ---- flatten NCHW -> channel-last rows [M, C]; per-row sigma column ----
    rows = jnp.transpose(x, (0, 2, 3, 1)).reshape(B * H * W, C)
    sig_rows = jnp.repeat(sigma, H * W).reshape(-1, 1)
    M = rows.shape[0]

    # ---- lane-dense padding: all last dims -> multiples of 128 (exact: zero pads) ----
    Cp = _round_up(C, 128)
    Hp = _round_up(Hd, 128)
    TM = min(tm, _round_up(M, 8))
    Mp = _round_up(M, TM)
    TH = 512 if Hp % 512 == 0 else (256 if Hp % 256 == 0 else 128)

    rows_p = jnp.pad(rows, ((0, Mp - M), (0, Cp - C)))
    sig_p = jnp.pad(sig_rows, ((0, Mp - M), (0, 0)))
    w1h_p = jnp.pad(w1h, ((0, Cp - C), (0, Hp - Hd))).astype(compute_dtype)
    w1g_p = jnp.pad(w1g, ((0, Cp - C), (0, Hp - Hd))).astype(compute_dtype)
    w2_p = jnp.pad(w2, ((0, Hp - Hd), (0, Cp - C))).astype(compute_dtype)
    b1h_p = jnp.pad(b1h, (0, Hp - Hd)).reshape(1, Hp).astype(jnp.float32)
    b1g_p = jnp.pad(b1g, (0, Hp - Hd)).reshape(1, Hp).astype(jnp.float32)
    b2_p = jnp.pad(b2, (0, Cp - C)).reshape(1, Cp).astype(jnp.float32)

    n_m = Mp // TM
    n_h = Hp // TH
    itemsize = jnp.dtype(compute_dtype).itemsize
    cost = pl.CostEstimate(
        flops=6 * Mp * Cp * Hp,
        transcendentals=Mp * Hp,
        bytes_accessed=(rows_p.size + Mp * Cp) * 4
        + (w1h_p.size + w1g_p.size + w2_p.size) * itemsize,
    )

    kernel = functools.partial(_edm_kernel, sigma_data=float(sigma_data),
                               compute_dtype=compute_dtype, approx_gelu=approx_gelu)

    out_p = pl.pallas_call(
        kernel,
        out_shape=jax.ShapeDtypeStruct((Mp, Cp), jnp.float32),
        grid=(n_m, n_h),
        in_specs=[
            pl.BlockSpec((TM, 1), lambda i, k: (i, 0)),    # per-row sigma
            pl.BlockSpec((TM, Cp), lambda i, k: (i, 0)),   # x rows (resident over k)
            pl.BlockSpec((Cp, TH), lambda i, k: (0, k)),   # w1 hidden half
            pl.BlockSpec((1, TH), lambda i, k: (0, k)),    # b1 hidden half
            pl.BlockSpec((Cp, TH), lambda i, k: (0, k)),   # w1 gate half
            pl.BlockSpec((1, TH), lambda i, k: (0, k)),    # b1 gate half
            pl.BlockSpec((TH, Cp), lambda i, k: (k, 0)),   # w2 slab
            pl.BlockSpec((1, Cp), lambda i, k: (0, 0)),    # b2
        ],
        out_specs=pl.BlockSpec((TM, Cp), lambda i, k: (i, 0)),
        scratch_shapes=[pltpu.VMEM((TM, Cp), jnp.float32)],
        compiler_params=pltpu.CompilerParams(
            dimension_semantics=("parallel", "arbitrary"),
            vmem_limit_bytes=48 * 1024 * 1024),
        cost_estimate=cost,
    )(sig_p, rows_p, w1h_p, b1h_p, w1g_p, b1g_p, w2_p, b2_p)

    out = out_p[:M, :C].reshape(B, H, W, C).transpose(0, 3, 1, 2)
    return out


def init_standin_model_params(key, channels, dtype=jnp.float32):
    """GEGLU MLP stand-in: Linear(C, 8C) split into hidden/gate + Linear(4C, C)."""
    C = channels
    Hd = 4 * C
    k = jax.random.split(key, 6)
    b_in = 1.0 / math.sqrt(C)
    b_hid = 1.0 / math.sqrt(Hd)
    w1h = jax.random.uniform(k[0], (C, Hd), dtype, -b_in, b_in)
    b1h = jax.random.uniform(k[1], (Hd,), dtype, -b_in, b_in)
    w1g = jax.random.uniform(k[2], (C, Hd), dtype, -b_in, b_in)
    b1g = jax.random.uniform(k[3], (Hd,), dtype, -b_in, b_in)
    w2 = jax.random.uniform(k[4], (Hd, C), dtype, -b_hid, b_hid)
    b2 = jax.random.uniform(k[5], (C,), dtype, -b_hid, b_hid)
    return w1h, b1h, w1g, b1g, w2, b2


def _reference(x, sigma, params, sigma_data, matmul_dtype=jnp.float32, approx_gelu=False):
    """Plain-JAX reference of the same EDMPrecond math."""
    w1h, b1h, w1g, b1g, w2, b2 = params
    B, C, H, W = x.shape
    sig = sigma.astype(jnp.float32).reshape(-1, 1, 1, 1)
    c_skip = sigma_data ** 2 / (sig ** 2 + sigma_data ** 2)
    c_out = sig * sigma_data / jnp.sqrt(sig ** 2 + sigma_data ** 2)
    c_in = 1.0 / jnp.sqrt(sigma_data ** 2 + sig ** 2)
    rows = jnp.transpose(c_in * x, (0, 2, 3, 1)).reshape(-1, C)
    rm = rows.astype(matmul_dtype)
    h = jnp.dot(rm, w1h.astype(matmul_dtype), preferred_element_type=jnp.float32) + b1h
    g = jnp.dot(rm, w1g.astype(matmul_dtype), preferred_element_type=jnp.float32) + b1g
    y = (h * _gelu(g, approx_gelu)).astype(matmul_dtype)
    f = jnp.dot(y, w2.astype(matmul_dtype), preferred_element_type=jnp.float32) + b2
    f = f.reshape(B, H, W, C).transpose(0, 3, 1, 2)
    return c_skip * x + c_out * f


if __name__ == "__main__":
    key = jax.random.PRNGKey(0)
    kx, ks, kp = jax.random.split(key, 3)

    batch, channels, res = 2, 4, 16            # x: [2, 4, 16, 16], sigma: [2]
    sigma_data = 0.5
    x = jax.random.normal(kx, (batch, channels, res, res), dtype=jnp.float32)
    sigma = jnp.exp(jax.random.normal(ks, (batch,), dtype=jnp.float32))   # positive noise levels
    params = init_standin_model_params(kp, channels)

    out = edm_precond_forward(x, sigma, params, sigma_data=sigma_data,
                              compute_dtype=jnp.bfloat16, approx_gelu=False)
    out = jax.block_until_ready(out)
    assert out.shape == x.shape

    # Numerics-matched reference (same bf16 matmul inputs, f32 accumulation, exact erf GELU).
    ref_bf16 = _reference(x, sigma, params, sigma_data, matmul_dtype=jnp.bfloat16)
    assert jnp.allclose(out, ref_bf16, atol=1e-2, rtol=1e-2), "mismatch vs bf16-matched reference"

    # Full-f32 reference = the PyTorch module math (tolerance loosened for bf16 matmuls).
    ref_f32 = _reference(x, sigma, params, sigma_data, matmul_dtype=jnp.float32)
    assert jnp.allclose(out, ref_f32, atol=5e-2, rtol=5e-2), "mismatch vs f32 reference"

    print("KERNEL_OK")
</pallas_src>

<mosaic_0001>
module attributes {stable_mosaic.version = 11 : i64} {
  func.func @_edm_kernel(%arg0: i32, %arg1: i32, %arg2: memref<256x1xf32, #tpu.memory_space<vmem>>, %arg3: memref<256x128xf32, #tpu.memory_space<vmem>>, %arg4: memref<128x128xbf16, #tpu.memory_space<vmem>>, %arg5: memref<1x128xf32, #tpu.memory_space<vmem>>, %arg6: memref<128x128xbf16, #tpu.memory_space<vmem>>, %arg7: memref<1x128xf32, #tpu.memory_space<vmem>>, %arg8: memref<128x128xbf16, #tpu.memory_space<vmem>>, %arg9: memref<1x128xf32, #tpu.memory_space<vmem>>, %arg10: memref<256x128xf32, #tpu.memory_space<vmem>>, %arg11: memref<256x128xf32, #tpu.memory_space<vmem>>) attributes {dimension_semantics = [#tpu.dimension_semantics<parallel>, #tpu.dimension_semantics<arbitrary>], iteration_bounds = array<i64: 2, 1>, scalar_prefetch = 0 : i64, scratch_operands = 1 : i64, tpu.core_type = #tpu.core_type<tc>, window_params = [{transform_indices = @transform_0, window_bounds = array<i64: 256, 1>}, {transform_indices = @transform_1, window_bounds = array<i64: 256, 128>}, {transform_indices = @transform_2, window_bounds = array<i64: 128, 128>}, {transform_indices = @transform_3, window_bounds = array<i64: 1, 128>}, {transform_indices = @transform_4, window_bounds = array<i64: 128, 128>}, {transform_indices = @transform_5, window_bounds = array<i64: 1, 128>}, {transform_indices = @transform_6, window_bounds = array<i64: 128, 128>}, {pipeline_mode = #tpu.pipeline_mode<synchronous>, transform_indices = @transform_7, window_bounds = array<i64: 1, 128>}, {transform_indices = @transform_8, window_bounds = array<i64: 256, 128>}]} {
    %c0_i32 = arith.constant 0 : i32
    %0 = arith.cmpi eq, %arg1, %c0_i32 : i32
    %1 = arith.extui %0 : i1 to i32
    %c0_i32_0 = arith.constant 0 : i32
    %2 = arith.cmpi ne, %1, %c0_i32_0 : i32
    scf.if %2 {
      %cst_26 = arith.constant 0.000000e+00 : f32
      %40 = vector.broadcast %cst_26 : f32 to vector<256x128xf32>
      %c0_27 = arith.constant 0 : index
      %c0_28 = arith.constant 0 : index
      %41 = vector.load %arg11[%c0_27, %c0_28] : memref<256x128xf32, #tpu.memory_space<vmem>>, vector<256x128xf32>
      tpu.vector_store %arg11[%c0_27, %c0_28], %40 {strides = array<i32>} : memref<256x128xf32, #tpu.memory_space<vmem>>, vector<256x128xf32>,
    } else {
    }
    %c0 = arith.constant 0 : index
    %c0_1 = arith.constant 0 : index
    %3 = vector.load %arg3[%c0, %c0_1] : memref<256x128xf32, #tpu.memory_space<vmem>>, vector<256x128xf32>
    %c0_2 = arith.constant 0 : index
    %c0_3 = arith.constant 0 : index
    %4 = vector.load %arg2[%c0_2, %c0_3] : memref<256x1xf32, #tpu.memory_space<vmem>>, vector<256x1xf32>
    %5 = arith.mulf %4, %4 : vector<256x1xf32>
    %cst = arith.constant 2.500000e-01 : f32
    %6 = vector.broadcast %cst : f32 to vector<256x1xf32>
    %7 = arith.addf %5, %6 : vector<256x1xf32>
    %8 = math.rsqrt %7 : vector<256x1xf32>
    %9 = vector.broadcast %8 : vector<256x1xf32> to vector<256x128xf32>
    %10 = arith.mulf %9, %3 : vector<256x128xf32>
    %11 = arith.truncf %10 : vector<256x128xf32> to vector<256x128xbf16>
    %c0_4 = arith.constant 0 : index
    %c0_5 = arith.constant 0 : index
    %12 = vector.load %arg4[%c0_4, %c0_5] : memref<128x128xbf16, #tpu.memory_space<vmem>>, vector<128x128xbf16>
    %cst_6 = arith.constant dense<0.000000e+00> : vector<256x128xf32>
    %13 = tpu.matmul %11, %12, %cst_6 {dimension_numbers = #tpu.dot_dimension_numbers<[1], [0], [0], [1], [0, 0, 1, 1], [], []>} : vector<256x128xbf16>, vector<128x128xbf16>, vector<256x128xf32> -> vector<256x128xf32>
    %c0_7 = arith.constant 0 : index
    %c0_8 = arith.constant 0 : index
    %14 = vector.load %arg5[%c0_7, %c0_8] : memref<1x128xf32, #tpu.memory_space<vmem>>, vector<1x128xf32>
    %15 = vector.broadcast %14 : vector<1x128xf32> to vector<256x128xf32>
    %16 = arith.addf %13, %15 : vector<256x128xf32>
    %c0_9 = arith.constant 0 : index
    %c0_10 = arith.constant 0 : index
    %17 = vector.load %arg6[%c0_9, %c0_10] : memref<128x128xbf16, #tpu.memory_space<vmem>>, vector<128x128xbf16>
    %cst_11 = arith.constant dense<0.000000e+00> : vector<256x128xf32>
    %18 = tpu.matmul %11, %17, %cst_11 {dimension_numbers = #tpu.dot_dimension_numbers<[1], [0], [0], [1], [0, 0, 1, 1], [], []>} : vector<256x128xbf16>, vector<128x128xbf16>, vector<256x128xf32> -> vector<256x128xf32>
    %c0_12 = arith.constant 0 : index
    %c0_13 = arith.constant 0 : index
    %19 = vector.load %arg7[%c0_12, %c0_13] : memref<1x128xf32, #tpu.memory_space<vmem>>, vector<1x128xf32>
    %20 = vector.broadcast %19 : vector<1x128xf32> to vector<256x128xf32>
    %21 = arith.addf %18, %20 : vector<256x128xf32>
    %cst_14 = arith.constant 5.000000e-01 : f32
    %22 = vector.broadcast %cst_14 : f32 to vector<256x128xf32>
    %23 = arith.mulf %22, %21 : vector<256x128xf32>
    %cst_15 = arith.constant 0.707106769 : f32
    %24 = vector.broadcast %cst_15 : f32 to vector<256x128xf32>
    %25 = arith.mulf %21, %24 : vector<256x128xf32>
    %26 = math.erf %25 : vector<256x128xf32>
    %cst_16 = arith.constant 1.000000e+00 : f32
    %27 = vector.broadcast %cst_16 : f32 to vector<256x128xf32>
    %28 = arith.addf %27, %26 : vector<256x128xf32>
    %29 = arith.mulf %23, %28 : vector<256x128xf32>
    %30 = arith.mulf %16, %29 : vector<256x128xf32>
    %31 = arith.truncf %30 : vector<256x128xf32> to vector<256x128xbf16>
    %c0_17 = arith.constant 0 : index
    %c0_18 = arith.constant 0 : index
    %32 = vector.load %arg11[%c0_17, %c0_18] : memref<256x128xf32, #tpu.memory_space<vmem>>, vector<256x128xf32>
    %c0_19 = arith.constant 0 : index
    %c0_20 = arith.constant 0 : index
    %33 = vector.load %arg8[%c0_19, %c0_20] : memref<128x128xbf16, #tpu.memory_space<vmem>>, vector<128x128xbf16>
    %cst_21 = arith.constant dense<0.000000e+00> : vector<256x128xf32>
    %34 = tpu.matmul %31, %33, %cst_21 {dimension_numbers = #tpu.dot_dimension_numbers<[1], [0], [0], [1], [0, 0, 1, 1], [], []>} : vector<256x128xbf16>, vector<128x128xbf16>, vector<256x128xf32> -> vector<256x128xf32>
    %35 = arith.addf %32, %34 : vector<256x128xf32>
    %c0_22 = arith.constant 0 : index
    %c0_23 = arith.constant 0 : index
    %36 = vector.load %arg11[%c0_22, %c0_23] : memref<256x128xf32, #tpu.memory_space<vmem>>, vector<256x128xf32>
    tpu.vector_store %arg11[%c0_22, %c0_23], %35 {strides = array<i32>} : memref<256x128xf32, #tpu.memory_space<vmem>>, vector<256x128xf32>,
    %c0_i32_24 = arith.constant 0 : i32
    %37 = arith.cmpi eq, %arg1, %c0_i32_24 : i32
    %38 = arith.extui %37 : i1 to i32
    %c0_i32_25 = arith.constant 0 : i32
    %39 = arith.cmpi ne, %38, %c0_i32_25 : i32
    scf.if %39 {
      %cst_26 = arith.constant 2.500000e-01 : f32
      %40 = vector.broadcast %cst_26 : f32 to vector<256x1xf32>
      %41 = arith.divf %40, %7 : vector<256x1xf32>
      %cst_27 = arith.constant 5.000000e-01 : f32
      %42 = vector.broadcast %cst_27 : f32 to vector<256x1xf32>
      %43 = arith.mulf %4, %42 : vector<256x1xf32>
      %44 = arith.mulf %43, %8 : vector<256x1xf32>
      %c0_28 = arith.constant 0 : index
      %c0_29 = arith.constant 0 : index
      %45 = vector.load %arg11[%c0_28, %c0_29] : memref<256x128xf32, #tpu.memory_space<vmem>>, vector<256x128xf32>
      %c0_30 = arith.constant 0 : index
      %c0_31 = arith.constant 0 : index
      %46 = vector.load %arg9[%c0_30, %c0_31] : memref<1x128xf32, #tpu.memory_space<vmem>>, vector<1x128xf32>
      %47 = vector.broadcast %46 : vector<1x128xf32> to vector<256x128xf32>
      %48 = arith.addf %45, %47 : vector<256x128xf32>
      %49 = vector.broadcast %41 : vector<256x1xf32> to vector<256x128xf32>
      %50 = arith.mulf %49, %3 : vector<256x128xf32>
      %51 = vector.broadcast %44 : vector<256x1xf32> to vector<256x128xf32>
      %52 = arith.mulf %51, %48 : vector<256x128xf32>
      %53 = arith.addf %50, %52 : vector<256x128xf32>
      %c0_32 = arith.constant 0 : index
      %c0_33 = arith.constant 0 : index
      %54 = vector.load %arg10[%c0_32, %c0_33] : memref<256x128xf32, #tpu.memory_space<vmem>>, vector<256x128xf32>
      tpu.vector_store %arg10[%c0_32, %c0_33], %53 {strides = array<i32>} : memref<256x128xf32, #tpu.memory_space<vmem>>, vector<256x128xf32>,
    } else {
    }
    return
  }
  func.func @transform_0(%arg0: i32, %arg1: i32) -> (i32, i32) {
    %c0_i32 = arith.constant 0 : i32
    %c0_i32_0 = arith.constant 0 : i32
    return %arg0, %c0_i32 : i32, i32
  }
  func.func @transform_1(%arg0: i32, %arg1: i32) -> (i32, i32) {
    %c0_i32 = arith.constant 0 : i32
    %c0_i32_0 = arith.constant 0 : i32
    return %arg0, %c0_i32 : i32, i32
  }
  func.func @transform_2(%arg0: i32, %arg1: i32) -> (i32, i32) {
    %c0_i32 = arith.constant 0 : i32
    %c0_i32_0 = arith.constant 0 : i32
    return %c0_i32, %arg1 : i32, i32
  }
  func.func @transform_3(%arg0: i32, %arg1: i32) -> (i32, i32) {
    %c0_i32 = arith.constant 0 : i32
    %c0_i32_0 = arith.constant 0 : i32
    return %c0_i32, %arg1 : i32, i32
  }
  func.func @transform_4(%arg0: i32, %arg1: i32) -> (i32, i32) {
    %c0_i32 = arith.constant 0 : i32
    %c0_i32_0 = arith.constant 0 : i32
    return %c0_i32, %arg1 : i32, i32
  }
  func.func @transform_5(%arg0: i32, %arg1: i32) -> (i32, i32) {
    %c0_i32 = arith.constant 0 : i32
    %c0_i32_0 = arith.constant 0 : i32
    return %c0_i32, %arg1 : i32, i32
  }
  func.func @transform_6(%arg0: i32, %arg1: i32) -> (i32, i32) {
    %c0_i32 = arith.constant 0 : i32
    %c0_i32_0 = arith.constant 0 : i32
    return %arg1, %c0_i32 : i32, i32
  }
  func.func @transform_7(%arg0: i32, %arg1: i32) -> (i32, i32) {
    %c0_i32 = arith.constant 0 : i32
    %c0_i32_0 = arith.constant 0 : i32
    %c0_i32_1 = arith.constant 0 : i32
    return %c0_i32, %c0_i32_0 : i32, i32
  }
  func.func @transform_8(%arg0: i32, %arg1: i32) -> (i32, i32) {
    %c0_i32 = arith.constant 0 : i32
    %c0_i32_0 = arith.constant 0 : i32
    return %arg0, %c0_i32 : i32, i32
  }
}

</mosaic_0001>

<bundles_post_ra>
// kernel: tpu_custom_call.1
= control target key start
LH: loop header
LB: loop body
LE: loop exit
PB: predicated region body
PF: predicated region fallthrough
CT: control target
= control target key end

     0   :  { %13 = vsyncpa [#allocation4], 0  ;;  %s4697_s0 = inlined_call_operand.vmem [shape: f32[512,1], index: 0, kind: input, shape index: {}]   ;;  %s4698_s1 = inlined_call_operand.vmem [shape: f32[512,128], index: 1, kind: input, shape index: {}]   ;;  %s4699_s2 = inlined_call_operand.hbm [shape: bf16[128,128], index: 2, kind: input, shape index: {}]   ;;  %s4700_s3 = inlined_call_operand.vmem [shape: f32[1,128], index: 3, kind: input, shape index: {}]   ;;  %s4701_s4 = inlined_call_operand.hbm [shape: bf16[128,128], index: 4, kind: input, shape index: {}]   ;;  %s4702_s5 = inlined_call_operand.vmem [shape: f32[1,128], index: 5, kind: input, shape index: {}]   ;;  %s4703_s6 = inlined_call_operand.hbm [shape: bf16[128,128], index: 6, kind: input, shape index: {}]   ;;  %s4704_s7 = inlined_call_operand.vmem [shape: f32[1,128], index: 7, kind: input, shape index: {}]   ;;  %s4705_s8 = inlined_call_operand.hbm [shape: f32[512,128], index: 8, kind: output, shape index: {}]  }
   0x1   :  { %14 = vsyncpa [#allocation7], 0 }
   0x2   :  { %15 = vsyncpa [#allocation5], 0 }
   0x3   :  { %17 = vsyncpa [#allocation5 + $0x1], 0  ;;  %s3471_s27 = smov 0   ;;  %s3473_s28 = smov 0  }
   0x4   :  { %s3475_s29 = smov 0   ;;  %s3477_s30 = smov 0  }
   0x5   :  { %s3479_s9 = smov 0   ;;  %s3481_s10 = smov 0  }
   0x6 LB: > { %s2641_s11 = sadd.s32 4294967295, %s3415_s10   ;;  %s2642_s12 = sadd.s32 4294967294, %s3415_s10   ;;  %s3415_s10 = sphi %s3481_s10, %s23_s10   ;;  %s3411_s9 = sphi %s3479_s9, %s4846_s9   ;;  %s3407_s30 = sphi %s3477_s30, %s4845_s30   ;;  %s3403_s29 = sphi %s3475_s29, %s4844_s29   ;;  %s3399_s28 = sphi %s3473_s28, %s4843_s28   ;;  %s3395_s27 = sphi %s3471_s27, %s4842_s27  }
   0x7   : > { %s35_s13 = sadd.s32 1, %s3411_s9  ;;  %s245_s14 = sadd.s32 1, %s3403_s29 }
   0x8   : > { %p37_p0 = scmp.ge.s32.totalorder %s35_s13, 2  ;;  %p255_p1 = scmp.ne.s32.totalorder %s3403_s29, %s3399_s28 }
   0x9   : > { %p256_p2 = scmp.eq.s32.totalorder %s2641_s11, 1  ;;  %p261_p3 = scmp.ne.s32.totalorder %s3399_s28, %s3395_s27 }
   0xa   : > { %s4848_s13 = smov (%p37_p0, %s35_s13), 0  ;;  %p262_p5 = scmp.eq.s32.totalorder %s2642_s12, 1 }
   0xb   : > { %p3511_p4 = por %p256_p2, %p255_p1  ;;  %s242_s16 = ssub.s32 %s3411_s9, %s4848_s13 }
   0xc   : > { %p2643_p6 = scmp.ge.s32.totalorder %s3415_s10, 1  ;;  %p243_p7 = scmp.eq.s32.totalorder %s242_s16, 0 }
   0xd   : > { %p3518_p8 = por %p262_p5, %p261_p3  ;;  %p269_p9 = scmp.lt.s32.totalorder %s3415_s10, 3 }
   0xe   : > { %s3524_s18 = scalar_select %p243_p7, %s3403_s29, %s245_s14  }
   0xf   : > { %s4735_s17 = scalar_select %p3518_p8, 1, 0 }
  0x10   : > { %p3526_p10 = pnand %p2643_p6, %p269_p9  ;;  %p3530_p11 = scmp.eq.s32.totalorder %s2641_s11, 0 }
  0x11   : > { %s3417_s21 = smov [#allocation6]   ;;  %s3418_s24 = smov [#allocation3]  }
  0x12   : > { %p2938_p12 = pneg %p3526_p10  ;;  %s304_s22 = sshll.u32 %s3417_s21, 4  ;;  %s305_s22 = int_to_ptr.vmem [resolvable:$true] %s304_s22 }
  0x13   : > { %s283_s25 = sshll.u32 %s3418_s24, 4  ;;  %s3264_s26 = scalar_lea.vmem %s305_s22, 1024  ;;  %s284_s25 = int_to_ptr.vmem [resolvable:$true] %s283_s25 }
  0x14   : > { %p3538_p13 = pnand %p3530_p11, %p2938_p12  ;;  %p3265_p1 = scmp.ne.s32.totalorder %s305_s22, %s3264_s26 }
  0x15   : > { %p3272_p5 = scmp.lt.s32.totalorder %s305_s22, %s305_s22  ;;  %p3273_p6 = scmp.lt.s32.totalorder %s3264_s26, %s3264_s26 }
  0x16   : > { %p3255_p0 = pneg %p3538_p13 }
  0x17   : > { %p3274_p7 = por %p3273_p6, %p3272_p5 }
  0x18   : > { %p3267_p2 = pnand %p3265_p1, %p3255_p0 }
  0x1a   : > { %p3268_p3 = pneg %p3267_p2 }
  0x1c   : > { %p3275_p9 = pnand %p3274_p7, %p3268_p3 }
  0x1e   : > { %3278 = shalt.err (!%p3275_p9)
}
  0x1f   : > { %s3419_s11 = smov 64   ;;  %s3420_s12 = smov 4  }
  0x20   : > { %2944 = dma.hbm_to_vmem [thread:$0]  (!%p3538_p13), %s4701_s4, 1024, %s305_s22, [#allocation7], %s3419_s11, %s3419_s11, %s3420_s12  }
  0x21   : > { %s3290_s21 = scalar_lea.vmem %s284_s25, 1024  ;;  %p3298_p8 = scmp.lt.s32.totalorder %s284_s25, %s284_s25 }
  0x22   : > { %p3291_p12 = scmp.ne.s32.totalorder %s284_s25, %s3290_s21  ;;  %p3299_p5 = scmp.lt.s32.totalorder %s3290_s21, %s3290_s21 }
  0x24   : > { %p3293_p1 = pnand %p3291_p12, %p3255_p0  ;;  %p3300_p3 = por %p3299_p5, %p3298_p8 }
  0x26   : > { %p3294_p2 = pneg %p3293_p1 }
  0x28   : > { %p3301_p6 = pnand %p3300_p3, %p3294_p2 }
  0x2a   : > { %3304 = shalt.err (!%p3301_p6)
}
  0x2b   : > { %2941 = dma.hbm_to_vmem [thread:$0]  (!%p3538_p13), %s4699_s2, 1024, %s284_s25, [#allocation4], %s3419_s11, %s3419_s11, %s3420_s12  }
  0x2c   : > { %s3421_s22 = smov [#allocation8]  }
  0x2d   : > { %s326_s14 = sshll.u32 %s3421_s22, 4  ;;  %s327_s14 = int_to_ptr.vmem [resolvable:$true] %s326_s14 }
  0x2e   : > { %s3316_s16 = scalar_lea.vmem %s327_s14, 1024  ;;  %p3324_p1 = scmp.lt.s32.totalorder %s327_s14, %s327_s14 }
  0x2f   : > { %p3317_p7 = scmp.ne.s32.totalorder %s327_s14, %s3316_s16  ;;  %p3325_p8 = scmp.lt.s32.totalorder %s3316_s16, %s3316_s16 }
  0x31   : > { %p3319_p9 = pnand %p3317_p7, %p3255_p0  ;;  %p3326_p2 = por %p3325_p8, %p3324_p1 }
  0x33   : > { %p3320_p12 = pneg %p3319_p9 }
  0x35   : > { %p3327_p5 = pnand %p3326_p2, %p3320_p12 }
  0x37   : > { %3330 = shalt.err (!%p3327_p5)
}
  0x38   : > { %2947 = dma.hbm_to_vmem [thread:$0]  (!%p3538_p13), %s4703_s6, 1024, %s327_s14, [#allocation7], %s3419_s11, %s3419_s11, %s3420_s12  }
  0x39   : > { %363 = sbr.rel (%p3526_p10) target bundleno = 758 (0x2f6), region = 52 }
  0x3e   : > { %3382 = dma.done.wait (%p3530_p11), [#allocation4], 1024  }
  0x3f   : > { %3384 = vsyncadd (%p3530_p11), [#allocation4], 4294966272 }
  0x40   : > { %3386 = dma.done.wait (%p3530_p11), [#allocation7], 2048  }
  0x41   : > { %3388 = vsyncadd (%p3530_p11), [#allocation7], 4294965248  ;;  %s2655_s23 = sshll.u32 %s3407_s30, 5  ;;  %v3422_v0 = vmov 0   ;;  %v3017_v46 = vld [vmem:[#allocation3 + $0x38] sm:$0xff]   ;;  %v3018_v47 = vld [vmem:[#allocation3 + $0x30] sm:$0xff]  }
  0x42   : > { %3016 = vset.pattern.permute.xlu1 %v3422_v0  ;;  %3015 = vset.pattern.permute.xlu0 %v3422_v0  ;;  %p417_p13 = scmp.lt.s32.totalorder %s2655_s23, 63  ;;  %v3019_v59 = vld [vmem:[#allocation3 + $0x28] sm:$0xff]   ;;  %s2691_s20 = sshll.u32 %s3407_s30, 12 }
  0x43   : > { %2908 = vmatprep.subr.bf16.mxu1 %v3017_v46  ;;  %2764 = vmatprep.subr.bf16.mxu0 %v3017_v46  ;;  %s4644_s21 = scalar_lea.hbm %s4705_s8, %s2691_s20  ;;  %s3423_s24 = smov [#allocation9]  }
  0x44   : > { %s4850_s23 = smov (!%p417_p13, %s2655_s23), 63  ;;  %2916 = vmatpush3.bf16.msra.mxu1 %v3017_v46  ;;  %2765 = vmatpush3.bf16.msra.mxu0 %v3017_v46 }
  0x45   : > { %s2656_s19 = sshll.u32 %s4850_s23, 3  ;;  %2909 = vmatprep.subr.bf16.mxu1 %v3018_v47  ;;  %2766 = vmatprep.subr.bf16.mxu0 %v3018_v47  ;;  %s413_s23 = sand.u32 1, %s3399_s28  }
  0x46   : > { %s3587_s12 = scalar_lea.vmem %s4697_s0, %s2656_s19  ;;  %s4025_s22 = scalar_lea.vmem %s4698_s1, %s2656_s19 }
  0x47   : > { %v3590_v1 = vld [vmem:[%s3587_s12 + $0x90] sm:$0xff]  ;;  %v3593_v2 = vld [vmem:[%s3587_s12 + $0x80] sm:$0xff]  ;;  %v3596_v3 = vld [vmem:[%s3587_s12 + $0x98] sm:$0xff]  ;;  %s2654_s11 = sshll.u32 %s413_s23, 8  ;;  %s4652_s30 = scalar_lea.sflag [#allocation5], %s413_s23 }
  0x48   : > { %v555_v4 = vmul.f32 %v3590_v1, %v3590_v1  ;;  %v553_v5 = vmul.f32 %v3593_v2, %v3593_v2  ;;  %v556_v6 = vmul.f32 %v3596_v3, %v3596_v3  ;;  %v3605_v7 = vld [vmem:[%s3587_s12 + $0x88] sm:$0xff]  ;;  %v3611_v9 = vld [vmem:[%s3587_s12 + $0xa0] sm:$0xff]  ;;  %v3620_v13 = vld [vmem:[%s3587_s12 + $0xb8] sm:$0xff]  ;;  %2917 = vmatpush3.bf16.msra.mxu1 %v3018_v47  ;;  %2767 = vmatpush3.bf16.msra.mxu0 %v3018_v47  ;;  %s3335_s19 = sshll.u32 %s3423_s24, 4  ;;  %s3336_s19 = int_to_ptr.vmem [resolvable:$false] %s3335_s19 }
  0x49   : > { %v3608_v8 = vld [vmem:[%s3587_s12 + $0xa8] sm:$0xff]  ;;  %v554_v10 = vmul.f32 %v3605_v7, %v3605_v7  ;;  %v557_v12 = vmul.f32 %v3611_v9, %v3611_v9  ;;  %v3623_v14 = vld [vmem:[%s3587_s12 + $0xb0] sm:$0xff]  ;;  %v560_v19 = vmul.f32 %v3620_v13, %v3620_v13  ;;  %v3637_v20 = vld [vmem:[%s3587_s12 + $0xc0] sm:$0xff]  ;;  %2910 = vmatprep.subr.bf16.mxu1 %v3019_v59  ;;  %2768 = vmatprep.subr.bf16.mxu0 %v3019_v59  ;;  %s3337_s25 = scalar_lea.vmem %s3336_s19, 8192 }
  0x4a   : > { %v558_v11 = vmul.f32 %v3608_v8, %v3608_v8  ;;  %v3626_v15 = vld [vmem:[%s3587_s12 + $0xc8] sm:$0xff]  ;;  %v3628_v16 = vadd.f32 0.25, %v555_v4  ;;  %v3630_v17 = vadd.f32 0.25, %v553_v5  ;;  %v3632_v18 = vadd.f32 0.25, %v556_v6  ;;  %v3644_v23 = vld [vmem:[%s3587_s12 + $0xd8] sm:$0xff]  ;;  %v3652_v26 = vld [vmem:[%s3587_s12 + $0xd0] sm:$0xff] }
  0x4b   : > { %v3639_v21 = vadd.f32 0.25, %v554_v10  ;;  %v559_v22 = vmul.f32 %v3623_v14, %v3623_v14  ;;  %v562_v25 = vmul.f32 %v3626_v15, %v3626_v15  ;;  %v3655_v27 = vadd.f32 0.25, %v557_v12  ;;  %v534_v29 = vld [vmem:[%s3587_s12 + $0xe8] sm:$0xff]  ;;  %v533_v32 = vld [vmem:[%s3587_s12 + $0xe0] sm:$0xff]  ;;  %v536_v35 = vld [vmem:[%s3587_s12 + $0xf8] sm:$0xff] }
  0x4c   : > { %4739 = vst [vmem:[#allocation13_spill] sm:$0xff] %v3628_v16  ;;  %4740 = vst [vmem:[#allocation14_spill] sm:$0xff] %v3630_v17  ;;  %3041 = vrsqrt.f32 %v3628_v16  ;;  %v3647_v24 = vadd.f32 0.25, %v558_v11  ;;  %v561_v28 = vmul.f32 %v3637_v20, %v3637_v20  ;;  %v3661_v30 = vadd.f32 0.25, %v560_v19  ;;  %v535_v38 = vld [vmem:[%s3587_s12 + $0xf0] sm:$0xff]  ;;  %v3677_v39 = vld [vmem:[%s3587_s12 + $0x8] sm:$0xff]  ;;  %2918 = vmatpush3.bf16.msra.mxu1 %v3019_v59  ;;  %2769 = vmatpush3.bf16.msra.mxu0 %v3019_v59 }
  0x4d   : > { %4741 = vst [vmem:[#allocation15_spill] sm:$0xff] %v3632_v18  ;;  %4742 = vst [vmem:[#allocation16_spill] sm:$0xff] %v3639_v21  ;;  %3043 = vrsqrt.f32 %v3630_v17  ;;  %v564_v31 = vmul.f32 %v3644_v23, %v3644_v23  ;;  %v3667_v33 = vadd.f32 0.25, %v559_v22  ;;  %v563_v34 = vmul.f32 %v3652_v26, %v3652_v26  ;;  %v3683_v42 = vld [vmem:[%s3587_s12] sm:$0xff]  ;;  %v3686_v43 = vld [vmem:[%s3587_s12 + $0x18] sm:$0xff] }
  0x4e   : > { %4743 = vst [vmem:[#allocation17_spill] sm:$0xff] %v3647_v24  ;;  %4744 = vst [vmem:[#allocation18_spill] sm:$0xff] %v3655_v27  ;;  %3045 = vrsqrt.f32 %v3632_v18  ;;  %v3673_v36 = vadd.f32 0.25, %v562_v25  ;;  %v566_v37 = vmul.f32 %v534_v29, %v534_v29  ;;  %v3680_v40 = vadd.f32 0.25, %v561_v28  ;;  %v3695_v50 = vld [vmem:[%s3587_s12 + $0x10] sm:$0xff]  ;;  %v3703_v53 = vld [vmem:[%s3587_s12 + $0x28] sm:$0xff] }
  0x4f   : > { %4745 = vst [vmem:[#allocation19_spill] sm:$0xff] %v3661_v30  ;;  %3047 = vrsqrt.f32 %v3639_v21  ;;  %4746 = vst [vmem:[#allocation20_spill] sm:$0xff] %v3667_v33  ;;  %v565_v41 = vmul.f32 %v533_v32, %v533_v32  ;;  %v3689_v44 = vadd.f32 0.25, %v564_v31  ;;  %v568_v45 = vmul.f32 %v536_v35, %v536_v35  ;;  %v3711_v56 = vld [vmem:[%s3587_s12 + $0x20] sm:$0xff]  ;;  %v3724_v62 = vld [vmem:[%s3587_s12 + $0x38] sm:$0xff] }
  0x50   : > { %3049 = vrsqrt.f32 %v3647_v24  ;;  %4747 = vst [vmem:[#allocation21_spill] sm:$0xff] %v3673_v36  ;;  %4748 = vst [vmem:[#allocation22_spill] sm:$0xff] %v3680_v40  ;;  %v3692_v48 = vadd.f32 0.25, %v563_v34  ;;  %v567_v49 = vmul.f32 %v535_v38, %v535_v38  ;;  %v3698_v51 = vadd.f32 0.25, %v566_v37  ;;  %v3727_v63 = vld [vmem:[%s3587_s12 + $0x30] sm:$0xff]  ;;  %v3735_v5 = vld [vmem:[%s3587_s12 + $0x48] sm:$0xff] }
  0x51   : > { %3051 = vrsqrt.f32 %v3655_v27  ;;  %4749 = vst [vmem:[#allocation23_spill] sm:$0xff] %v3689_v44  ;;  %v538_v52 = vmul.f32 %v3677_v39, %v3677_v39  ;;  %v3706_v54 = vadd.f32 0.25, %v565_v41  ;;  %v537_v55 = vmul.f32 %v3683_v42, %v3683_v42  ;;  %v3755_v28 = vld [vmem:[%s3587_s12 + $0x40] sm:$0xff]  ;;  %v3766_v35 = vld [vmem:[%s3587_s12 + $0x58] sm:$0xff]  ;;  %v3774_v41 = vld [vmem:[%s3587_s12 + $0x50] sm:$0xff] }
  0x52   : > { %3053 = vrsqrt.f32 %v3661_v30  ;;  %4750 = vst [vmem:[#allocation24_spill] sm:$0xff] %v3692_v48  ;;  %4751 = vst [vmem:[#allocation25_spill] sm:$0xff] %v3698_v51  ;;  %v3714_v57 = vadd.f32 0.25, %v568_v45  ;;  %v540_v58 = vmul.f32 %v3686_v43, %v3686_v43  ;;  %v3719_v60 = vadd.f32 0.25, %v567_v49  ;;  %v3020_v29 = vld [vmem:[#allocation3 + $0x20] sm:$0xff]   ;;  %v3777_v45 = vld [vmem:[%s3587_s12 + $0x68] sm:$0xff] }
  0x53   : > { %3055 = vrsqrt.f32 %v3667_v33  ;;  %4752 = vst [vmem:[#allocation26_spill] sm:$0xff] %v3706_v54  ;;  %v539_v61 = vmul.f32 %v3695_v50, %v3695_v50  ;;  %v3730_v0 = vadd.f32 0.25, %v538_v52  ;;  %v542_v4 = vmul.f32 %v3703_v53, %v3703_v53  ;;  %v3787_v52 = vld [vmem:[%s3587_s12 + $0x60] sm:$0xff]  ;;  %2911 = vmatprep.subr.bf16.mxu1 %v3020_v29  ;;  %2770 = vmatprep.subr.bf16.mxu0 %v3020_v29  ;;  %v3022_v30 = vld [vmem:[#allocation3 + $0x10] sm:$0xff]   ;;  %v3023_v17 = vld [vmem:[#allocation3 + $0x8] sm:$0xff]  }
  0x54   : > { %3057 = vrsqrt.f32 %v3673_v36  ;;  %4753 = vst [vmem:[#allocation27_spill] sm:$0xff] %v3714_v57  ;;  %4754 = vst [vmem:[#allocation28_spill] sm:$0xff] %v3719_v60  ;;  %v3740_v10 = vadd.f32 0.25, %v537_v55  ;;  %v541_v11 = vmul.f32 %v3711_v56, %v3711_v56  ;;  %v3748_v19 = vadd.f32 0.25, %v540_v58  ;;  %2919 = vmatpush3.bf16.msra.mxu1 %v3020_v29  ;;  %2771 = vmatpush3.bf16.msra.mxu0 %v3020_v29 }
  0x55   : > { %3059 = vrsqrt.f32 %v3680_v40  ;;  %v544_v22 = vmul.f32 %v3724_v62, %v3724_v62  ;;  %v543_v25 = vmul.f32 %v3727_v63, %v3727_v63  ;;  %v3761_v32 = vadd.f32 0.25, %v539_v61 }
  0x56   : > { %3061 = vrsqrt.f32 %v3689_v44  ;;  %v546_v34 = vmul.f32 %v3735_v5, %v3735_v5  ;;  %v3771_v38 = vadd.f32 0.25, %v542_v4  ;;  %v3782_v47 = vadd.f32 0.25, %v541_v11  ;;  %v3800_v11 = vld [vmem:[%s3587_s12 + $0x78] sm:$0xff] }
  0x57   : > { %3063 = vrsqrt.f32 %v3692_v48  ;;  %v545_v49 = vmul.f32 %v3755_v28, %v3755_v28  ;;  %v3793_v58 = vadd.f32 0.25, %v544_v22  ;;  %v3795_v61 = vadd.f32 0.25, %v543_v25 }
  0x58   : > { %3065 = vrsqrt.f32 %v3698_v51  ;;  %v548_v4 = vmul.f32 %v3766_v35, %v3766_v35  ;;  %v3806_v59 = vadd.f32 0.25, %v546_v34  ;;  %v547_v22 = vmul.f32 %v3774_v41, %v3774_v41 }
  0x59   : > { %v3737_v6 = vpop.eup %3041  ;;  %3067 = vrsqrt.f32 %v3706_v54  ;;  %4755 = vst [vmem:[#allocation29_spill] sm:$0xff] %v3793_v58  ;;  %4756 = vst [vmem:[#allocation30_spill] sm:$0xff] %v3795_v61  ;;  %v550_v25 = vmul.f32 %v3777_v45, %v3777_v45  ;;  %v3813_v54 = vld [vmem:[%s3587_s12 + $0x70] sm:$0xff]  ;;  %v3821_v44 = vadd.f32 0.25, %v545_v49  ;;  %v549_v34 = vmul.f32 %v3787_v52, %v3787_v52 }
  0x5a   : > { %v3744_v12 = vpop.eup %3043  ;;  %725 = vperm.xlu1 %3016, %v3737_v6   ;;  %3069 = vrsqrt.f32 %v3714_v57  ;;  %4757 = vst [vmem:[#allocation31_spill] sm:$0xff] %v3806_v59  ;;  %v3829_v36 = vadd.f32 0.25, %v548_v4  ;;  %v552_v33 = vmul.f32 %v3800_v11, %v3800_v11  ;;  %v3837_v29 = vadd.f32 0.25, %v547_v22 }
  0x5b   : > { %v3757_v31 = vpop.eup %3045  ;;  %715 = vperm.xlu0 %3015, %v3744_v12   ;;  %3071 = vrsqrt.f32 %v3719_v60  ;;  %v3021_v60 = vld [vmem:[#allocation3 + $0x18] sm:$0xff]   ;;  %4758 = vst [vmem:[#allocation32_spill] sm:$0xff] %v3821_v44  ;;  %v3839_v27 = vadd.f32 0.25, %v550_v25  ;;  %v551_v24 = vmul.f32 %v3813_v54, %v3813_v54  ;;  %v3849_v18 = vadd.f32 0.25, %v549_v34 }
  0x5c   : > { %v3768_v37 = vpop.eup %3047  ;;  %3073 = vrsqrt.f32 %v3730_v0  ;;  %4759 = vst [vmem:[#allocation33_spill] sm:$0xff] %v3829_v36  ;;  %2912 = vmatprep.subr.bf16.mxu1 %v3021_v60  ;;  %4760 = vst [vmem:[#allocation34_spill] sm:$0xff] %v3837_v29  ;;  %2772 = vmatprep.subr.bf16.mxu0 %v3021_v60  ;;  %v3855_v25 = vadd.f32 0.25, %v552_v33  ;;  %v1902_v21 = vmul.f32 0.5, %v3677_v39  ;;  %v1904_v34 = vmul.f32 0.5, %v3686_v43 }
  0x5d   : > { %v3779_v46 = vpop.eup %3049  ;;  %3075 = vrsqrt.f32 %v3740_v10  ;;  %4761 = vst [vmem:[#allocation35_spill] sm:$0xff] %v3839_v27  ;;  %4763 = vst [vmem:[#allocation37_spill] sm:$0xff] %v3849_v18  ;;  %2920 = vmatpush3.bf16.msra.mxu1 %v3021_v60  ;;  %2773 = vmatpush3.bf16.msra.mxu0 %v3021_v60  ;;  %v3863_v60 = vadd.f32 0.25, %v551_v24  ;;  %v1903_v39 = vmul.f32 0.5, %v3695_v50  ;;  %v3024_v24 = vld [vmem:[#allocation3] sm:$0xff]   ;;  %v1905_v50 = vmul.f32 0.5, %v3711_v56 }
  0x5e   : > { %v3789_v55 = vpop.eup %3051  ;;  %730 = vperm.xlu1 %3016, %v3757_v31   ;;  %3077 = vrsqrt.f32 %v3748_v19  ;;  %4765 = vst [vmem:[#allocation39_spill] sm:$0xff] %v3855_v25  ;;  %2913 = vmatprep.subr.bf16.mxu1 %v3022_v30 }
  0x5f   : > { %v3802_v57 = vpop.eup %3053  ;;  %720 = vperm.xlu0 %3015, %v3768_v37   ;;  %3079 = vrsqrt.f32 %v3761_v32  ;;  %4766 = vst [vmem:[#allocation40_spill] sm:$0xff] %v3863_v60  ;;  %2774 = vmatprep.subr.bf16.mxu0 %v3022_v30 }
  0x60   : > { %v3815_v51 = vpop.eup %3055  ;;  %3081 = vrsqrt.f32 %v3771_v38 }
  0x61   : > { %v3818_v48 = vpop.eup %3057  ;;  %3083 = vrsqrt.f32 %v3782_v47  ;;  %2921 = vmatpush3.bf16.msra.mxu1 %v3022_v30  ;;  %2775 = vmatpush3.bf16.msra.mxu0 %v3022_v30 }
  0x62   : > { %v3825_v40 = vpop.eup %3059  ;;  %740 = vperm.xlu1 %3016, %v3779_v46   ;;  %3085 = vrsqrt.f32 %v3793_v58  ;;  %2914 = vmatprep.subr.bf16.mxu1 %v3023_v17 }
  0x63   : > { %v3833_v49 = vpop.eup %3061  ;;  %735 = vperm.xlu0 %3015, %v3789_v55   ;;  %3087 = vrsqrt.f32 %v3795_v61  ;;  %2776 = vmatprep.subr.bf16.mxu0 %v3023_v17 }
  0x64   : > { %v3843_v4 = vpop.eup %3063  ;;  %3089 = vrsqrt.f32 %v3806_v59  ;;  %v1901_v59 = vmul.f32 0.5, %v3683_v42 }
  0x65   : > { %v3846_v16 = vpop.eup %3065  ;;  %3091 = vrsqrt.f32 %v3821_v44  ;;  %2922 = vmatpush3.bf16.msra.mxu1 %v3023_v17  ;;  %v1907_v44 = vmul.f32 0.5, %v3727_v63  ;;  %2777 = vmatpush3.bf16.msra.mxu0 %v3023_v17 }
  0x66   : > { %4762 = vst [vmem:[#allocation36_spill] sm:$0xff] %v3846_v16  ;;  %v3851_v22 = vpop.eup %3067  ;;  %750 = vperm.xlu1 %3016, %v3802_v57   ;;  %3093 = vrsqrt.f32 %v3829_v36  ;;  %2915 = vmatprep.subr.bf16.mxu1 %v3024_v24 }
  0x67   : > { %4764 = vst [vmem:[#allocation38_spill] sm:$0xff] %v3851_v22  ;;  %v3859_v61 = vpop.eup %3069  ;;  %745 = vperm.xlu0 %3015, %v3815_v51   ;;  %3095 = vrsqrt.f32 %v3837_v29  ;;  %2778 = vmatprep.subr.bf16.mxu0 %v3024_v24 }
  0x68   : > { %v3866_v36 = vpop.eup %3071  ;;  %3097 = vrsqrt.f32 %v3839_v27  ;;  %v1906_v27 = vmul.f32 0.5, %v3703_v53 }
  0x69   : > { %v3869_v33 = vpop.eup %3073  ;;  %3099 = vrsqrt.f32 %v3849_v18  ;;  %2923 = vmatpush3.bf16.msra.mxu1 %v3024_v24  ;;  %2779 = vmatpush3.bf16.msra.mxu0 %v3024_v24 }
  0x6a   : > { %v3873_v42 = vpop.eup %3075  ;;  %760 = vperm.xlu1 %3016, %v3818_v48   ;;  %3101 = vrsqrt.f32 %v3855_v25  ;;  %v3878_v43 = vmul.f32 %v3869_v33, %v1902_v21  ;;  %v1908_v25 = vmul.f32 0.5, %v3724_v62  ;;  %v1910_v62 = vmul.f32 0.5, %v3735_v5 }
  0x6b   : > { %v3881_v29 = vpop.eup %3077  ;;  %755 = vperm.xlu0 %3015, %v3825_v40   ;;  %3103 = vrsqrt.f32 %v3863_v60  ;;  %v3886_v30 = vmul.f32 %v3873_v42, %v1901_v59  ;;  %v3897_v59 = vld [vmem:[#allocation6 + $0x38] sm:$0xff]  }
  0x6c   : > { %4767 = vst [vmem:[#allocation41_spill] sm:$0xff] %v3878_v43  ;;  %v3080_v18 = vpop.eup %3079  ;;  %v3891_v21 = vmul.f32 %v3881_v29, %v1904_v34  ;;  %2812 = vmatprep.subr.bf16.mxu1 %v3897_v59  ;;  %3105 = vrcp.f32 %v3730_v0 }
  0x6d   : > { %4768 = vst [vmem:[#allocation42_spill] sm:$0xff] %v3886_v30  ;;  %v3082_v43 = vpop.eup %3081  ;;  %v3893_v53 = vmul.f32 %v3080_v18, %v1903_v39  ;;  %v1909_v39 = vmul.f32 0.5, %v3755_v28  ;;  %v1914_v28 = vmul.f32 0.5, %v3777_v45  ;;  %3107 = vrcp.f32 %v3740_v10  ;;  %v4777_v10 = vld [vmem:[#allocation31_spill] sm:$0xff] }
  0x6e   : > { %4769 = vst [vmem:[#allocation43_spill] sm:$0xff] %v3891_v21  ;;  %v3084_v60 = vpop.eup %3083  ;;  %770 = vperm.xlu1 %3016, %v3833_v49   ;;  %v3899_v56 = vmul.f32 %v3082_v43, %v1906_v27  ;;  %v1911_v27 = vmul.f32 0.5, %v3774_v41  ;;  %v1916_v41 = vmul.f32 0.5, %v3800_v11  ;;  %3109 = vrcp.f32 %v3748_v19 }
  0x6f   : > { %4770 = vst [vmem:[#allocation44_spill] sm:$0xff] %v3893_v53  ;;  %v3086_v30 = vpop.eup %3085  ;;  %765 = vperm.xlu0 %3015, %v3843_v4   ;;  %v3903_v34 = vmul.f32 %v3084_v60, %v1905_v50  ;;  %v1912_v53 = vmul.f32 0.5, %v3766_v35  ;;  %3111 = vrcp.f32 %v3761_v32 }
  0x70   : > { %v3088_v63 = vpop.eup %3087  ;;  %v3906_v17 = vmul.f32 %v3086_v30, %v1908_v25  ;;  %3113 = vrcp.f32 %v3771_v38  ;;  %v4778_v38 = vld [vmem:[#allocation32_spill] sm:$0xff] }
  0x71   : > { %v3090_v21 = vpop.eup %3089  ;;  %v3909_v58 = vmul.f32 %v3088_v63, %v1907_v44  ;;  %v1913_v44 = vmul.f32 0.5, %v3787_v52  ;;  %v1918_v52 = vmul.f32 0.5, %v3605_v7  ;;  %v1919_v7 = vmul.f32 0.5, %v3590_v1 }
  0x72   : > { %4771 = vst [vmem:[#allocation45_spill] sm:$0xff] %v3906_v17  ;;  %v3092_v5 = vpop.eup %3091  ;;  %780 = vperm.xlu1 %3016, %v3846_v16   ;;  %v3914_v50 = vmul.f32 %v3090_v21, %v1910_v62  ;;  %v1915_v62 = vmul.f32 0.5, %v3813_v54  ;;  %v1924_v1 = vmul.f32 0.5, %v3620_v13  ;;  %3115 = vrcp.f32 %v3782_v47 }
  0x73   : > { %4772 = vst [vmem:[#allocation46_spill] sm:$0xff] %v3909_v58  ;;  %v3094_v25 = vpop.eup %3093  ;;  %775 = vperm.xlu0 %3015, %v3851_v22   ;;  %v3918_v35 = vmul.f32 %v3092_v5, %v1909_v39  ;;  %v3940_v54 = vmul.f32 %v3768_v37, %v1918_v52  ;;  %v1921_v37 = vmul.f32 0.5, %v3611_v9  ;;  %v1926_v9 = vmul.f32 0.5, %v3626_v15 }
  0x74   : > { %4773 = vst [vmem:[#allocation47_spill] sm:$0xff] %v3914_v50  ;;  %v3096_v58 = vpop.eup %3095  ;;  %v3921_v17 = vmul.f32 %v3094_v25, %v1912_v53  ;;  %v1917_v53 = vmul.f32 0.5, %v3593_v2 }
  0x75   : > { %v3098_v24 = vpop.eup %3097  ;;  %v3924_v16 = vmul.f32 %v3096_v58, %v1911_v27  ;;  %v3978_v13 = vmul.f32 %v3818_v48, %v1926_v9 }
  0x76   : > { %4774 = vst [vmem:[#allocation48_spill] sm:$0xff] %v3921_v17  ;;  %v3100_v50 = vpop.eup %3099  ;;  %790 = vperm.xlu1 %3016, %v3859_v61   ;;  %v3928_v45 = vmul.f32 %v3098_v24, %v1914_v28  ;;  %v3943_v28 = vmul.f32 %v3744_v12, %v1917_v53  ;;  %v1922_v12 = vmul.f32 0.5, %v3608_v8  ;;  %v4785_v53 = vld [vmem:[#allocation16_spill] sm:$0xff] }
  0x77   : > { %v3102_v22 = vpop.eup %3101  ;;  %785 = vperm.xlu0 %3015, %v3866_v36   ;;  %v3931_v39 = vmul.f32 %v3100_v50, %v1913_v44  ;;  %v1920_v44 = vmul.f32 0.5, %v3596_v3  ;;  %v3962_v3 = vmul.f32 %v3789_v55, %v1921_v37  ;;  %v4779_v55 = vld [vmem:[#allocation33_spill] sm:$0xff] }
  0x78   : > { %v3104_v11 = vpop.eup %3103  ;;  %v3935_v17 = vmul.f32 %v3102_v22, %v1916_v41  ;;  %v3954_v41 = vmul.f32 %v3737_v6, %v1919_v7  ;;  %v1925_v6 = vmul.f32 0.5, %v3637_v20  ;;  %v4786_v7 = vld [vmem:[#allocation14_spill] sm:$0xff] }
  0x79   : > { %v3937_v27 = vmul.f32 %v3104_v11, %v1915_v62  ;;  %v3951_v2 = vmul.f32 %v3757_v31, %v1920_v44  ;;  %v1923_v31 = vmul.f32 0.5, %v3623_v14  ;;  %v3106_v48 = vpop.eup %3105 }
  0x7a   : > { %640 = vperm.xlu1 %3016, %v3869_v33   ;;  %v3959_v33 = vmul.f32 %v3779_v46, %v1922_v12  ;;  %v3981_v14 = vmul.f32 %v3825_v40, %v1925_v6  ;;  %v4775_v40 = vld [vmem:[#allocation29_spill] sm:$0xff]  ;;  %v1840_v0 = vmul.f32 0.25, %v3106_v48 }
  0x7b   : > { %635 = vperm.xlu0 %3015, %v3873_v42   ;;  %v3971_v8 = vmul.f32 %v3815_v51, %v1923_v31  ;;  %v1928_v51 = vmul.f32 0.5, %v3644_v23  ;;  %3117 = vrcp.f32 %v4775_v40  ;;  %v4776_v23 = vld [vmem:[#allocation30_spill] sm:$0xff]  ;;  %v4788_v6 = vld [vmem:[#allocation13_spill] sm:$0xff] }
  0x7c   : > { %3119 = vrcp.f32 %v4776_v23  ;;  %v4789_v40 = vld [vmem:[#allocation17_spill] sm:$0xff] }
  0x7d   : > { %v3988_v15 = vmul.f32 %v3833_v49, %v1928_v51  ;;  %3121 = vrcp.f32 %v4777_v10 }
  0x7e   : > { %650 = vperm.xlu1 %3016, %v3881_v29   ;;  %3123 = vrcp.f32 %v4778_v38  ;;  %v4780_v29 = vld [vmem:[#allocation34_spill] sm:$0xff] }
  0x7f   : > { %645 = vperm.xlu0 %3015, %v3080_v18   ;;  %v3968_v18 = vmul.f32 %v3802_v57, %v1924_v1  ;;  %v1927_v57 = vmul.f32 0.5, %v3652_v26  ;;  %v3108_v26 = vpop.eup %3107  ;;  %3125 = vrcp.f32 %v4779_v55  ;;  %v4787_v1 = vld [vmem:[#allocation15_spill] sm:$0xff] }
  0x80   : > { %v3110_v19 = vpop.eup %3109  ;;  %v1838_v32 = vmul.f32 0.25, %v3108_v26  ;;  %3127 = vrcp.f32 %v4780_v29  ;;  %v4790_v26 = vld [vmem:[#allocation18_spill] sm:$0xff] }
  0x81   : > { %v3991_v20 = vmul.f32 %v3843_v4, %v1927_v57  ;;  %v3112_v46 = vpop.eup %3111  ;;  %v1844_v47 = vmul.f32 0.25, %v3110_v19  ;;  %v4791_v19 = vld [vmem:[#allocation19_spill] sm:$0xff] }
  0x82   : > { %660 = vperm.xlu1 %3016, %v3082_v43   ;;  %v1842_v49 = vmul.f32 0.25, %v3112_v46  ;;  %v4792_v46 = vld [vmem:[#allocation20_spill] sm:$0xff] }
  0x83   : > { %655 = vperm.xlu0 %3015, %v3084_v60   ;;  %v4781_v60 = vld [vmem:[#allocation35_spill] sm:$0xff] }
  0x84   : > { %3129 = vrcp.f32 %v4781_v60 }
  0x86   : > { %670 = vperm.xlu1 %3016, %v3086_v30   ;;  %v4782_v30 = vld [vmem:[#allocation37_spill] sm:$0xff] }
  0x87   : > { %665 = vperm.xlu0 %3015, %v3088_v63   ;;  %3131 = vrcp.f32 %v4782_v30 }
  0x8a   : > { %680 = vperm.xlu1 %3016, %v3090_v21  }
  0x8b   : > { %675 = vperm.xlu0 %3015, %v3092_v5   ;;  %v4783_v5 = vld [vmem:[#allocation39_spill] sm:$0xff] }
  0x8c   : > { %3133 = vrcp.f32 %v4783_v5 }
  0x8e   : > { %690 = vperm.xlu1 %3016, %v3094_v25  }
  0x8f   : > { %685 = vperm.xlu0 %3015, %v3096_v58   ;;  %v3114_v58 = vpop.eup %3113 }
  0x90   : > { %v3116_v4 = vpop.eup %3115 }
  0x91   : > { %v3118_v42 = vpop.eup %3117  ;;  %v1846_v43 = vmul.f32 0.25, %v3116_v4  ;;  %v4794_v4 = vld [vmem:[#allocation22_spill] sm:$0xff] }
  0x92   : > { %700 = vperm.xlu1 %3016, %v3098_v24   ;;  %v3120_v21 = vpop.eup %3119  ;;  %v1852_v63 = vmul.f32 0.25, %v3118_v42  ;;  %v4784_v24 = vld [vmem:[#allocation40_spill] sm:$0xff]  ;;  %v4795_v42 = vld [vmem:[#allocation23_spill] sm:$0xff] }
  0x93   : > { %695 = vperm.xlu0 %3015, %v3100_v50   ;;  %v3122_v50 = vpop.eup %3121  ;;  %v1850_v25 = vmul.f32 0.25, %v3120_v21  ;;  %3135 = vrcp.f32 %v4784_v24  ;;  %v4796_v21 = vld [vmem:[#allocation24_spill] sm:$0xff] }
  0x94   : > { %v3124_v62 = vpop.eup %3123  ;;  %v1856_v52 = vmul.f32 0.25, %v3122_v50  ;;  %3137 = vrcp.f32 %v4785_v53  ;;  %v4797_v50 = vld [vmem:[#allocation25_spill] sm:$0xff] }
  0x95   : > { %v1854_v44 = vmul.f32 0.25, %v3124_v62  ;;  %3139 = vrcp.f32 %v4786_v7  ;;  %v4798_v62 = vld [vmem:[#allocation26_spill] sm:$0xff] }
  0x96   : > { %710 = vperm.xlu1 %3016, %v3102_v22   ;;  %v1848_v22 = vmul.f32 0.25, %v3114_v58  ;;  %3141 = vrcp.f32 %v4787_v1  ;;  %v4793_v58 = vld [vmem:[#allocation21_spill] sm:$0xff] }
  0x97   : > { %705 = vperm.xlu0 %3015, %v3104_v11   ;;  %v3126_v11 = vpop.eup %3125  ;;  %3143 = vrcp.f32 %v4788_v6 }
  0x98   : > { %v3128_v12 = vpop.eup %3127  ;;  %v1860_v37 = vmul.f32 0.25, %v3126_v11  ;;  %3145 = vrcp.f32 %v4789_v40  ;;  %v4799_v11 = vld [vmem:[#allocation27_spill] sm:$0xff] }
  0x99   : > { %v3130_v31 = vpop.eup %3129  ;;  %v1858_v9 = vmul.f32 0.25, %v3128_v12  ;;  %3147 = vrcp.f32 %v4790_v26  ;;  %v4800_v12 = vld [vmem:[#allocation28_spill] sm:$0xff] }
  0x9a   : > { %2043 = vperm.xlu1 %3016, %v1840_v0   ;;  %v3132_v51 = vpop.eup %3131  ;;  %v1864_v57 = vmul.f32 0.25, %v3130_v31  ;;  %3149 = vrcp.f32 %v4791_v19 }
  0x9b   : > { %2038 = vperm.xlu0 %3015, %v1838_v32   ;;  %v3134_v48 = vpop.eup %3133  ;;  %v1862_v23 = vmul.f32 0.25, %v3132_v51  ;;  %3151 = vrcp.f32 %v4792_v46 }
  0x9c   : > { %v1868_v10 = vmul.f32 0.25, %v3134_v48  ;;  %3153 = vrcp.f32 %v4793_v58  ;;  %v489_v58 = vld [vmem:[%s4025_s22 + $0x80] sm:$0xff] }
  0x9d   : > { %3155 = vrcp.f32 %v4794_v4 }
  0x9e   : > { %2053 = vperm.xlu1 %3016, %v1844_v47   ;;  %3157 = vrcp.f32 %v4795_v42  ;;  %v4801_v42 = vld [vmem:[#allocation41_spill] sm:$0xff] }
  0x9f   : > { %2048 = vperm.xlu0 %3015, %v1842_v49   ;;  %3159 = vrcp.f32 %v4796_v21  ;;  %v4802_v21 = vld [vmem:[#allocation42_spill] sm:$0xff] }
  0xa0   : > { %v3136_v0 = vpop.eup %3135  ;;  %3161 = vrcp.f32 %v4797_v50  ;;  %v493_v50 = vld [vmem:[%s4025_s22 + $0xa0] sm:$0xff] }
  0xa1   : > { %v3138_v32 = vpop.eup %3137  ;;  %v1866_v38 = vmul.f32 0.25, %v3136_v0  ;;  %3163 = vrcp.f32 %v4798_v62 }
  0xa2   : > { %2063 = vperm.xlu1 %3016, %v1848_v22   ;;  %v3140_v47 = vpop.eup %3139  ;;  %v1872_v55 = vmul.f32 0.25, %v3138_v32  ;;  %3165 = vrcp.f32 %v4799_v11  ;;  %v3026_v11 = vld [vmem:[#allocation6 + $0x30] sm:$0xff]  }
  0xa3   : > { %2058 = vperm.xlu0 %3015, %v1846_v43   ;;  %v3142_v49 = vpop.eup %3141  ;;  %v1870_v29 = vmul.f32 0.25, %v3140_v47  ;;  %3167 = vrcp.f32 %v4800_v12  ;;  %v491_v47 = vld [vmem:[%s4025_s22 + $0x90] sm:$0xff]  ;;  %v496_v12 = vld [vmem:[%s4025_s22 + $0xb8] sm:$0xff] }
  0xa4   : > { %v3144_v22 = vpop.eup %3143  ;;  %v1876_v60 = vmul.f32 0.25, %v3142_v49  ;;  %v490_v49 = vld [vmem:[%s4025_s22 + $0x88] sm:$0xff] }
  0xa5   : > { %v3146_v43 = vpop.eup %3145  ;;  %v1874_v30 = vmul.f32 0.25, %v3144_v22 }
  0xa6   : > { %2073 = vperm.xlu1 %3016, %v1852_v63   ;;  %v3148_v63 = vpop.eup %3147  ;;  %v1880_v5 = vmul.f32 0.25, %v3146_v43 }
  0xa7   : > { %2068 = vperm.xlu0 %3015, %v1850_v25   ;;  %v3150_v25 = vpop.eup %3149  ;;  %v1878_v24 = vmul.f32 0.25, %v3148_v63  ;;  %v494_v63 = vld [vmem:[%s4025_s22 + $0xa8] sm:$0xff] }
  0xa8   : > { %v1884_v53 = vmul.f32 0.25, %v3150_v25 }
  0xaa   : > { %2083 = vperm.xlu1 %3016, %v1856_v52   ;;  %v3152_v52 = vpop.eup %3151 }
  0xab   : > { %2078 = vperm.xlu0 %3015, %v1854_v44   ;;  %v3154_v44 = vpop.eup %3153  ;;  %v1882_v7 = vmul.f32 0.25, %v3152_v52 }
  0xac   : > { %v1888_v1 = vmul.f32 0.25, %v3154_v44 }
  0xae   : > { %2093 = vperm.xlu1 %3016, %v1860_v37   ;;  %v3156_v37 = vpop.eup %3155 }
  0xaf   : > { %2088 = vperm.xlu0 %3015, %v1858_v9   ;;  %v3158_v31 = vpop.eup %3157  ;;  %v1886_v9 = vmul.f32 0.25, %v3156_v37  ;;  %v495_v37 = vld [vmem:[%s4025_s22 + $0xb0] sm:$0xff] }
  0xb0   : > { %v3160_v6 = vpop.eup %3159  ;;  %v1892_v51 = vmul.f32 0.25, %v3158_v31 }
  0xb1   : > { %v1890_v40 = vmul.f32 0.25, %v3160_v6 }
  0xb2   : > { %2103 = vperm.xlu1 %3016, %v1864_v57   ;;  %v3162_v57 = vpop.eup %3161 }
  0xb3   : > { %2098 = vperm.xlu0 %3015, %v1862_v23   ;;  %v3164_v48 = vpop.eup %3163  ;;  %v1896_v23 = vmul.f32 0.25, %v3162_v57 }
  0xb4   : > { %v3166_v26 = vpop.eup %3165  ;;  %v1894_v0 = vmul.f32 0.25, %v3164_v48  ;;  %v497_v48 = vld [vmem:[%s4025_s22 + $0xc0] sm:$0xff] }
  0xb5   : > { %v1900_v19 = vmul.f32 0.25, %v3166_v26 }
  0xb6   : > { %2113 = vperm.xlu1 %3016, %v1868_v10   ;;  %v3168_v10 = vpop.eup %3167 }
  0xb7   : > { %2108 = vperm.xlu0 %3015, %v1866_v38   ;;  %v1898_v32 = vmul.f32 0.25, %v3168_v10  ;;  %v4805_v10 = vld [vmem:[#allocation45_spill] sm:$0xff] }
  0xba   : > { %2123 = vperm.xlu1 %3016, %v1872_v55   ;;  %v492_v55 = vld [vmem:[%s4025_s22 + $0x98] sm:$0xff] }
  0xbb   : > { %2118 = vperm.xlu0 %3015, %v1870_v29  }
  0xbe   : > { %2133 = vperm.xlu1 %3016, %v1876_v60  }
  0xbf   : > { %2128 = vperm.xlu0 %3015, %v1874_v30  }
  0xc2   : > { %2143 = vperm.xlu1 %3016, %v1880_v5  }
  0xc3   : > { %2138 = vperm.xlu0 %3015, %v1878_v24  }
  0xc6   : > { %2153 = vperm.xlu1 %3016, %v1884_v53   ;;  %v4803_v53 = vld [vmem:[#allocation43_spill] sm:$0xff] }
  0xc7   : > { %2148 = vperm.xlu0 %3015, %v1882_v7   ;;  %v4804_v7 = vld [vmem:[#allocation44_spill] sm:$0xff] }
  0xca   : > { %2163 = vperm.xlu1 %3016, %v1888_v1  }
  0xcb   : > { %2158 = vperm.xlu0 %3015, %v1886_v9  }
  0xce   : > { %2173 = vperm.xlu1 %3016, %v1892_v51   ;;  %v3027_v51 = vld [vmem:[#allocation6 + $0x28] sm:$0xff]  }
  0xcf   : > { %2168 = vperm.xlu0 %3015, %v1890_v40   ;;  %v498_v40 = vld [vmem:[%s4025_s22 + $0xc8] sm:$0xff] }
  0xd2   : > { %2183 = vperm.xlu1 %3016, %v1896_v23  }
  0xd3   : > { %2178 = vperm.xlu0 %3015, %v1894_v0  }
  0xd5   : > { %v726_v38 = vpop.permute.xlu1 %725 }
  0xd6   : > { %v716_v46 = vpop.permute.xlu0 %715  ;;  %2193 = vperm.xlu1 %3016, %v1900_v19   ;;  %v811_v4 = vmul.f32 %v726_v38, %v491_v47  ;;  %v499_v38 = vld [vmem:[%s4025_s22 + $0xd0] sm:$0xff] }
  0xd7   : > { %2188 = vperm.xlu0 %3015, %v1898_v32   ;;  %v809_v43 = vmul.f32 %v716_v46, %v489_v58  ;;  %v4806_v32 = vld [vmem:[#allocation46_spill] sm:$0xff] }
  0xd9   : > { %v731_v29 = vpop.permute.xlu1 %730 }
  0xda   : > { %v812_v22 = vmul.f32 %v731_v29, %v492_v55  ;;  %v721_v60 = vpop.permute.xlu0 %720  ;;  %2235 = vperm.xlu1 %3016, %v4801_v42   ;;  %v3029_v29 = vld [vmem:[#allocation6 + $0x18] sm:$0xff]  }
  0xdb   : > { %v810_v30 = vmul.f32 %v721_v60, %v490_v49  ;;  %2230 = vperm.xlu0 %3015, %v4802_v21   ;;  %v4807_v49 = vld [vmem:[#allocation47_spill] sm:$0xff]  ;;  %v501_v60 = vld [vmem:[%s4025_s22 + $0xe0] sm:$0xff] }
  0xdc   : > { %v4034_v5 = vpack.c.bf16 %v812_v22, %v811_v4  ;;  %v502_v22 = vld [vmem:[%s4025_s22 + $0xe8] sm:$0xff] }
  0xdd   : > { %v741_v25 = vpop.permute.xlu1 %740  ;;  %v4037_v24 = vpack.c.bf16 %v810_v30, %v809_v43 }
  0xde   : > { %v814_v62 = vmul.f32 %v741_v25, %v494_v63  ;;  %v736_v52 = vpop.permute.xlu0 %735  ;;  %2245 = vperm.xlu1 %3016, %v4803_v53   ;;  %v4808_v63 = vld [vmem:[#allocation48_spill] sm:$0xff] }
  0xdf   : > { %v813_v44 = vmul.f32 %v736_v52, %v493_v50  ;;  %2240 = vperm.xlu0 %3015, %v4804_v7   ;;  %2796 = vmatprep.mubr.bf16.mxu1 %v4037_v24  ;;  %v3030_v50 = vld [vmem:[#allocation6 + $0x10] sm:$0xff]   ;;  %v3031_v7 = vld [vmem:[#allocation6 + $0x8] sm:$0xff]  }
  0xe0   : > { %2797 = vmatmul.mubr.bf16.vlgmr.msra.gmra.mxu1 %v4034_v5 }
  0xe1   : > { %v4045_v1 = vpack.c.bf16 %v814_v62, %v813_v44  ;;  %2813 = vmatpush3.bf16.msra.mxu1 %v3897_v59  ;;  %v751_v31 = vpop.permute.xlu1 %750  ;;  %v503_v62 = vld [vmem:[%s4025_s22 + $0xf0] sm:$0xff] }
  0xe2   : > { %v816_v9 = vmul.f32 %v751_v31, %v496_v12  ;;  %v746_v6 = vpop.permute.xlu0 %745  ;;  %2255 = vperm.xlu1 %3016, %v3899_v56   ;;  %2814 = vmatprep.subr.bf16.mxu1 %v3026_v11  ;;  %v3028_v56 = vld [vmem:[#allocation6 + $0x20] sm:$0xff]  }
  0xe3   : > { %v815_v57 = vmul.f32 %v746_v6, %v495_v37  ;;  %2250 = vperm.xlu0 %3015, %v3903_v34   ;;  %2800 = vmatprep.mubr.bf16.mxu1 %v4045_v1  ;;  %v500_v34 = vld [vmem:[%s4025_s22 + $0xd8] sm:$0xff]  ;;  %v4083_v37 = vld [vmem:[%s4025_s22] sm:$0xff] }
  0xe5   : > { %v4053_v23 = vpack.c.bf16 %v816_v9, %v815_v57  ;;  %2815 = vmatpush3.bf16.msra.mxu1 %v3026_v11  ;;  %v761_v59 = vpop.permute.xlu1 %760  ;;  %v4092_v57 = vld [vmem:[%s4025_s22 + $0x18] sm:$0xff] }
  0xe6   : > { %v818_v26 = vmul.f32 %v761_v59, %v498_v40  ;;  %v756_v0 = vpop.permute.xlu0 %755  ;;  %2265 = vperm.xlu1 %3016, %v4805_v10   ;;  %2816 = vmatprep.subr.bf16.mxu1 %v3027_v51  ;;  %v4096_v40 = vld [vmem:[%s4025_s22 + $0x10] sm:$0xff]  ;;  %v4106_v10 = vld [vmem:[%s4025_s22 + $0x20] sm:$0xff] }
  0xe7   : > { %v817_v19 = vmul.f32 %v756_v0, %v497_v48  ;;  %2260 = vperm.xlu0 %3015, %v4806_v32  }
  0xe8   : > { %2801 = vmatmul.mubr.bf16.gmra.mxu1 %v4053_v23 }
  0xe9   : > { %v4060_v46 = vpack.c.bf16 %v818_v26, %v817_v19  ;;  %2817 = vmatpush3.bf16.msra.mxu1 %v3027_v51  ;;  %v771_v47 = vpop.permute.xlu1 %770  ;;  %v3032_v51 = vld [vmem:[#allocation6] sm:$0xff]  }
  0xea   : > { %v820_v55 = vmul.f32 %v771_v47, %v500_v34  ;;  %v766_v58 = vpop.permute.xlu0 %765  ;;  %2275 = vperm.xlu1 %3016, %v4807_v49   ;;  %2818 = vmatprep.subr.bf16.mxu1 %v3028_v56 }
  0xeb   : > { %v819_v4 = vmul.f32 %v766_v58, %v499_v38  ;;  %2270 = vperm.xlu0 %3015, %v3918_v35   ;;  %2804 = vmatprep.mubr.bf16.mxu1 %v4060_v46  ;;  %v504_v35 = vld [vmem:[%s4025_s22 + $0xf8] sm:$0xff]  ;;  %v4116_v38 = vld [vmem:[%s4025_s22 + $0x30] sm:$0xff] }
  0xed   : > { %v4067_v42 = vpack.c.bf16 %v820_v55, %v819_v4  ;;  %2819 = vmatpush3.bf16.msra.mxu1 %v3028_v56  ;;  %v781_v43 = vpop.permute.xlu1 %780 }
  0xee   : > { %v822_v30 = vmul.f32 %v781_v43, %v502_v22  ;;  %v776_v21 = vpop.permute.xlu0 %775  ;;  %2285 = vperm.xlu1 %3016, %v4808_v63   ;;  %2820 = vmatprep.subr.bf16.mxu1 %v3029_v29 }
  0xef   : > { %v821_v25 = vmul.f32 %v776_v21, %v501_v60  ;;  %2280 = vperm.xlu0 %3015, %v3924_v16   ;;  %v4080_v16 = vld [vmem:[%s4025_s22 + $0x8] sm:$0xff] }
  0xf0   : > { %2805 = vmatmul.mubr.bf16.gmra.mxu1 %v4067_v42 }
  0xf1   : > { %v4074_v52 = vpack.c.bf16 %v822_v30, %v821_v25  ;;  %2821 = vmatpush3.bf16.msra.mxu1 %v3029_v29  ;;  %v791_v53 = vpop.permute.xlu1 %790  ;;  %v4126_v29 = vld [vmem:[%s4025_s22 + $0x40] sm:$0xff]  ;;  %v4136_v30 = vld [vmem:[%s4025_s22 + $0x50] sm:$0xff] }
  0xf2   : > { %v824_v11 = vmul.f32 %v791_v53, %v504_v35  ;;  %v786_v44 = vpop.permute.xlu0 %785  ;;  %2295 = vperm.xlu1 %3016, %v3928_v45   ;;  %2822 = vmatprep.subr.bf16.mxu1 %v3030_v50  ;;  %v3234_v53 = vld [vmem:[%s3587_s12 + $0xe0] sm:$0xff] }
  0xf3   : > { %v823_v12 = vmul.f32 %v786_v44, %v503_v62  ;;  %2290 = vperm.xlu0 %3015, %v3931_v39   ;;  %2808 = vmatprep.mubr.bf16.mxu1 %v4074_v52  ;;  %v4144_v62 = vld [vmem:[%s4025_s22 + $0x68] sm:$0xff]  ;;  %v4148_v44 = vld [vmem:[%s4025_s22 + $0x60] sm:$0xff] }
  0xf5   : > { %v4085_v31 = vpack.c.bf16 %v824_v11, %v823_v12  ;;  %2823 = vmatpush3.bf16.msra.mxu1 %v3030_v50  ;;  %v641_v9 = vpop.permute.xlu1 %640  ;;  %v1929_v11 = vmul.f32 0.5, %v3234_v53  ;;  %v3038_v53 = vld [vmem:[#allocation8 + $0x10] sm:$0xff]  }
  0xf6   : > { %v794_v6 = vmul.f32 %v641_v9, %v4080_v16  ;;  %v636_v45 = vpop.permute.xlu0 %635  ;;  %2305 = vperm.xlu1 %3016, %v3935_v17   ;;  %2824 = vmatprep.subr.bf16.mxu1 %v3031_v7 }
  0xf7   : > { %v793_v39 = vmul.f32 %v636_v45, %v4083_v37  ;;  %2300 = vperm.xlu0 %3015, %v3937_v27   ;;  %v4103_v27 = vld [vmem:[%s4025_s22 + $0x28] sm:$0xff]  ;;  %v3235_v45 = vld [vmem:[%s3587_s12 + $0xf8] sm:$0xff] }
  0xf8   : > { %2809 = vmatmul.mubr.bf16.gmra.mxu1 %v4085_v31 }
  0xf9   : > { %2825 = vmatpush3.bf16.msra.mxu1 %v3031_v7  ;;  %v651_v48 = vpop.permute.xlu1 %650  ;;  %v825_v59 = vpack.c.bf16 %v794_v6, %v793_v39  ;;  %v4809_v6 = vld [vmem:[#allocation36_spill] sm:$0xff] }
  0xfa   : > { %v796_v26 = vmul.f32 %v651_v48, %v4092_v57  ;;  %v646_v17 = vpop.permute.xlu0 %645  ;;  %2315 = vperm.xlu1 %3016, %v3940_v54   ;;  %2826 = vmatprep.subr.bf16.mxu1 %v3032_v51  ;;  %v488_v48 = vld [vmem:[%s4025_s22 + $0x78] sm:$0xff] }
  0xfb   : > { %v795_v0 = vmul.f32 %v646_v17, %v4096_v40  ;;  %2310 = vperm.xlu0 %3015, %v3943_v28   ;;  %2780 = vmatprep.mubr.bf16.mxu0 %v825_v59  ;;  %v4113_v28 = vld [vmem:[%s4025_s22 + $0x38] sm:$0xff]  ;;  %v3236_v17 = vld [vmem:[%s3587_s12 + $0xf0] sm:$0xff] }
  0xfc   : > { %2828 = vmatprep.mubr.bf16.mxu1 %v825_v59  ;;  %v4810_v59 = vld [vmem:[#allocation38_spill] sm:$0xff] }
  0xfd   : > { %v826_v56 = vpack.c.bf16 %v796_v26, %v795_v0  ;;  %2827 = vmatpush3.bf16.msra.mxu1 %v3032_v51  ;;  %v661_v19 = vpop.permute.xlu1 %660  ;;  %v1932_v51 = vmul.f32 0.5, %v3235_v45  ;;  %v1961_v26 = vmul.f32 %v4810_v59, %v1929_v11  ;;  %v1931_v0 = vmul.f32 0.5, %v3236_v17  ;;  %v3039_v11 = vld [vmem:[#allocation8 + $0x8] sm:$0xff]  }
  0xfe   : > { %v798_v32 = vmul.f32 %v661_v19, %v4103_v27  ;;  %v656_v34 = vpop.permute.xlu0 %655  ;;  %2325 = vperm.xlu1 %3016, %v3951_v2  }
  0xff   : > { %v797_v54 = vmul.f32 %v656_v34, %v4106_v10  ;;  %2320 = vperm.xlu0 %3015, %v3954_v41   ;;  %2781 = vmatmul.mubr.bf16.vlgmr.msra.gmra.mxu0 %v826_v56  ;;  %v4123_v41 = vld [vmem:[%s4025_s22 + $0x48] sm:$0xff] }
 0x100   : > { %2829 = vmatmul.mubr.bf16.vlgmr.msra.gmra.mxu1 %v826_v56  ;;  %v487_v56 = vld [vmem:[%s4025_s22 + $0x70] sm:$0xff] }
 0x101   : > { %v827_v47 = vpack.c.bf16 %v798_v32, %v797_v54  ;;  %v671_v55 = vpop.permute.xlu1 %670  ;;  %v1964_v54 = vmul.f32 %v3859_v61, %v1932_v51 }
 0x102   : > { %v800_v58 = vmul.f32 %v671_v55, %v4113_v28  ;;  %v666_v49 = vpop.permute.xlu0 %665  ;;  %2335 = vperm.xlu1 %3016, %v3959_v33  }
 0x103   : > { %v799_v2 = vmul.f32 %v666_v49, %v4116_v38  ;;  %2330 = vperm.xlu0 %3015, %v3962_v3   ;;  %2784 = vmatprep.mubr.bf16.mxu0 %v827_v47  ;;  %v4133_v3 = vld [vmem:[%s4025_s22 + $0x58] sm:$0xff] }
 0x104   : > { %2832 = vmatprep.mubr.bf16.mxu1 %v827_v47 }
 0x105   : > { %v828_v4 = vpack.c.bf16 %v800_v58, %v799_v2  ;;  %v681_v22 = vpop.permute.xlu1 %680 }
 0x106   : > { %v802_v60 = vmul.f32 %v681_v22, %v4123_v41  ;;  %v676_v43 = vpop.permute.xlu0 %675  ;;  %2345 = vperm.xlu1 %3016, %v3968_v18   ;;  %v3233_v18 = vld [vmem:[%s3587_s12 + $0xe8] sm:$0xff]  ;;  %s4517_s12 = scalar_lea.vmem [#allocation9], %s2654_s11 }
 0x107   : > { %v801_v33 = vmul.f32 %v676_v43, %v4126_v29  ;;  %2340 = vperm.xlu0 %3015, %v3971_v8   ;;  %2785 = vmatmul.mubr.bf16.gmra.mxu0 %v828_v4  ;;  %v1930_v35 = vmul.f32 0.5, %v3233_v18  ;;  %s2498_s26 = sshll.u32 %s4517_s12, 4  ;;  %s4646_s26 = int_to_ptr.vmem [resolvable:$true] %s2498_s26 }
 0x108   : > { %2833 = vmatmul.mubr.bf16.gmra.mxu1 %v828_v4  ;;  %p3338_p3 = scmp.lt.s32.totalorder %s4646_s26, %s3336_s19 }
 0x109   : > { %v829_v21 = vpack.c.bf16 %v802_v60, %v801_v33  ;;  %v691_v63 = vpop.permute.xlu1 %690 }
 0x10a   : > { %v804_v50 = vmul.f32 %v691_v63, %v4133_v3  ;;  %v686_v25 = vpop.permute.xlu0 %685  ;;  %2355 = vperm.xlu1 %3016, %v3978_v13  }
 0x10b   : > { %v803_v8 = vmul.f32 %v686_v25, %v4136_v30  ;;  %2350 = vperm.xlu0 %3015, %v3981_v14   ;;  %2788 = vmatprep.mubr.bf16.mxu0 %v829_v21  ;;  %v1962_v14 = vmul.f32 %v4809_v6, %v1930_v35 }
 0x10c   : > { %2836 = vmatprep.mubr.bf16.mxu1 %v829_v21 }
 0x10d   : > { %v830_v7 = vpack.c.bf16 %v804_v50, %v803_v8  ;;  %v701_v13 = vpop.permute.xlu1 %700  ;;  %v3034_v8 = vld [vmem:[#allocation8 + $0x30] sm:$0xff]  }
 0x10e   : > { %v806_v12 = vmul.f32 %v701_v13, %v4144_v62  ;;  %v696_v9 = vpop.permute.xlu0 %695  ;;  %2365 = vperm.xlu1 %3016, %v3988_v15  }
 0x10f   : > { %v805_v39 = vmul.f32 %v696_v9, %v4148_v44  ;;  %2360 = vperm.xlu0 %3015, %v3991_v20   ;;  %2789 = vmatmul.mubr.bf16.gmra.mxu0 %v830_v7  ;;  %v1963_v20 = vmul.f32 %v3866_v36, %v1931_v0 }
 0x110   : > { %2837 = vmatmul.mubr.bf16.gmra.mxu1 %v830_v7 }
 0x111   : > { %v831_v19 = vpack.c.bf16 %v806_v12, %v805_v39  ;;  %v711_v32 = vpop.permute.xlu1 %710 }
 0x112   : > { %v808_v34 = vmul.f32 %v711_v32, %v488_v48  ;;  %v706_v15 = vpop.permute.xlu0 %705  ;;  %2375 = vperm.xlu1 %3016, %v1962_v14  }
 0x113   : > { %v807_v47 = vmul.f32 %v706_v15, %v487_v56  ;;  %2370 = vperm.xlu0 %3015, %v1961_v26   ;;  %2792 = vmatprep.mubr.bf16.mxu0 %v831_v19 }
 0x114   : > { %2840 = vmatprep.mubr.bf16.mxu1 %v831_v19  ;;  %v4245_v19 = vld [vmem:[%s4702_s5] ss:$0 sm:$0xff] }
 0x115   : > { %v832_v55 = vpack.c.bf16 %v808_v34, %v807_v47  ;;  %v2044_v58 = vpop.permute.xlu1 %2043 }
 0x116   : > { %v4163_v49 = vmul.f32 %v2044_v58, %v4080_v16  ;;  %v2039_v2 = vpop.permute.xlu0 %2038  ;;  %2385 = vperm.xlu1 %3016, %v1964_v54  }
 0x117   : > { %v4166_v4 = vmul.f32 %v2039_v2, %v4083_v37  ;;  %2380 = vperm.xlu0 %3015, %v1963_v20   ;;  %2793 = vmatmul.mubr.bf16.gmra.mxu0 %v832_v55 }
 0x118   : > { %4811 = vst [vmem:[#allocation29_spill] sm:$0xff] %v4163_v49  ;;  %2841 = vmatmul.mubr.bf16.gmra.mxu1 %v832_v55 }
 0x119   : > { %4812 = vst [vmem:[#allocation30_spill] sm:$0xff] %v4166_v4  ;;  %2844 = vmatprep.mubr.bf16.mxu1 %v4037_v24  ;;  %v2054_v61 = vpop.permute.xlu1 %2053 }
 0x11a   : > { %v4170_v22 = vmul.f32 %v2054_v61, %v4092_v57  ;;  %v2049_v36 = vpop.permute.xlu0 %2048 }
 0x11b   : > { %v4173_v60 = vmul.f32 %v2049_v36, %v4096_v40 }
 0x11c   : > { %4813 = vst [vmem:[#allocation31_spill] sm:$0xff] %v4170_v22 }
 0x11d   : > { %v2064_v16 = vpop.permute.xlu1 %2063 }
 0x11e   : > { %v4176_v43 = vmul.f32 %v2064_v16, %v4103_v27  ;;  %v2059_v33 = vpop.permute.xlu0 %2058 }
 0x11f   : > { %v4179_v37 = vmul.f32 %v2059_v33, %v4106_v10 }
 0x120   : > { %4814 = vst [vmem:[#allocation32_spill] sm:$0xff] %v4176_v43  ;;  %2845 = vmatmul.mubr.bf16.gmra.mxu1 %v4034_v5 }
 0x121   : > { %4815 = vst [vmem:[#allocation33_spill] sm:$0xff] %v4179_v37  ;;  %2848 = vmatprep.mubr.bf16.mxu1 %v4045_v1  ;;  %v2074_v24 = vpop.permute.xlu1 %2073 }
 0x122   : > { %v4184_v57 = vmul.f32 %v2074_v24, %v4113_v28  ;;  %v2069_v21 = vpop.permute.xlu0 %2068 }
 0x123   : > { %v4187_v40 = vmul.f32 %v2069_v21, %v4116_v38 }
 0x124   : > { %4816 = vst [vmem:[#allocation34_spill] sm:$0xff] %v4184_v57 }
 0x125   : > { %4817 = vst [vmem:[#allocation35_spill] sm:$0xff] %v4187_v40  ;;  %v2084_v63 = vpop.permute.xlu1 %2083 }
 0x126   : > { %v4190_v27 = vmul.f32 %v2084_v63, %v4123_v41  ;;  %v2079_v50 = vpop.permute.xlu0 %2078 }
 0x127   : > { %v4193_v10 = vmul.f32 %v2079_v50, %v4126_v29 }
 0x128   : > { %4818 = vst [vmem:[#allocation37_spill] sm:$0xff] %v4190_v27  ;;  %2849 = vmatmul.mubr.bf16.gmra.mxu1 %v4053_v23 }
 0x129   : > { %4819 = vst [vmem:[#allocation39_spill] sm:$0xff] %v4193_v10  ;;  %2852 = vmatprep.mubr.bf16.mxu1 %v4060_v46  ;;  %v2094_v5 = vpop.permute.xlu1 %2093 }
 0x12a   : > { %v4198_v1 = vmul.f32 %v2094_v5, %v4133_v3  ;;  %v2089_v28 = vpop.permute.xlu0 %2088 }
 0x12b   : > { %v4201_v38 = vmul.f32 %v2089_v28, %v4136_v30  ;;  %v3033_v30 = vld [vmem:[#allocation8 + $0x38] sm:$0xff]  }
 0x12c   : > { %4820 = vst [vmem:[#allocation40_spill] sm:$0xff] %v4198_v1  ;;  %2860 = vmatprep.subr.bf16.mxu0 %v3033_v30 }
 0x12d   : > { %4821 = vst [vmem:[#allocation16_spill] sm:$0xff] %v4201_v38  ;;  %v2104_v25 = vpop.permute.xlu1 %2103  ;;  %2861 = vmatpush3.bf16.msra.mxu0 %v3033_v30 }
 0x12e   : > { %v4204_v41 = vmul.f32 %v2104_v25, %v4144_v62  ;;  %v2099_v18 = vpop.permute.xlu0 %2098  ;;  %2862 = vmatprep.subr.bf16.mxu0 %v3034_v8  ;;  %v3035_v62 = vld [vmem:[#allocation8 + $0x28] sm:$0xff]  }
 0x12f   : > { %v4207_v29 = vmul.f32 %v2099_v18, %v4148_v44 }
 0x130   : > { %4822 = vst [vmem:[#allocation14_spill] sm:$0xff] %v4204_v41  ;;  %2853 = vmatmul.mubr.bf16.gmra.mxu1 %v4067_v42  ;;  %v3036_v42 = vld [vmem:[#allocation8 + $0x20] sm:$0xff]  }
 0x131   : > { %4823 = vst [vmem:[#allocation15_spill] sm:$0xff] %v4207_v29  ;;  %2856 = vmatprep.mubr.bf16.mxu1 %v4074_v52  ;;  %v2114_v23 = vpop.permute.xlu1 %2113  ;;  %2863 = vmatpush3.bf16.msra.mxu0 %v3034_v8  ;;  %v3037_v52 = vld [vmem:[#allocation8 + $0x18] sm:$0xff]  }
 0x132   : > { %v4211_v46 = vmul.f32 %v2114_v23, %v488_v48  ;;  %v2109_v3 = vpop.permute.xlu0 %2108  ;;  %2864 = vmatprep.subr.bf16.mxu0 %v3035_v62 }
 0x133   : > { %v4213_v35 = vmul.f32 %v2109_v3, %v487_v56 }
 0x134   : > { %4824 = vst [vmem:[#allocation13_spill] sm:$0xff] %v4211_v46 }
 0x135   : > { %4825 = vst [vmem:[#allocation17_spill] sm:$0xff] %v4213_v35  ;;  %2865 = vmatpush3.bf16.msra.mxu0 %v3035_v62 }
 0x136   : > { %2866 = vmatprep.subr.bf16.mxu0 %v3036_v42 }
 0x138   : > { %2857 = vmatmul.mubr.bf16.gmra.mxu1 %v4085_v31  ;;  %v3040_v31 = vld [vmem:[#allocation8] sm:$0xff]  }
 0x139   : > { %2867 = vmatpush3.bf16.msra.mxu0 %v3036_v42 }
 0x13a   : > { %2868 = vmatprep.subr.bf16.mxu0 %v3037_v52 }
 0x13d   : > { %2869 = vmatpush3.bf16.msra.mxu0 %v3037_v52 }
 0x13e   : > { %2870 = vmatprep.subr.bf16.mxu0 %v3038_v53 }
 0x141   : > { %2871 = vmatpush3.bf16.msra.mxu0 %v3038_v53 }
 0x142   : > { %2872 = vmatprep.subr.bf16.mxu0 %v3039_v11 }
 0x145   : > { %2873 = vmatpush3.bf16.msra.mxu0 %v3039_v11  ;;  %v4257_v11 = vld [vmem:[%s4700_s3] ss:$0 sm:$0xff] }
 0x146   : > { %2874 = vmatprep.subr.bf16.mxu0 %v3040_v31 }
 0x149   : > { %2875 = vmatpush3.bf16.msra.mxu0 %v3040_v31 }
 0x1a0   : > { %v2798_v44 = vpop.f32.mrf.mxu1 }
 0x1a2   : > { %v1010_v7 = vpop.f32.mrf.mxu1 }
 0x1a4   : > { %v2799_v13 = vpop.f32.mrf.mxu1 }
 0x1a6   : > { %v4216_v12 = vpop.f32.mrf.mxu1 }
 0x1a8   : > { %v4218_v9 = vpop.f32.mrf.mxu1 }
 0x1aa   : > { %v4220_v6 = vpop.f32.mrf.mxu1 }
 0x1ac   : > { %v4222_v14 = vpop.f32.mrf.mxu1 }
 0x1ae   : > { %v4224_v45 = vpop.f32.mrf.mxu1 }
 0x1b0   : > { %v4226_v51 = vpop.f32.mrf.mxu1 }
 0x1b2   : > { %v4228_v39 = vpop.f32.mrf.mxu1 }
 0x1b4   : > { %v4230_v48 = vpop.f32.mrf.mxu1 }
 0x1b6   : > { %v4232_v59 = vpop.f32.mrf.mxu1 }
 0x1b8   : > { %v4234_v26 = vpop.f32.mrf.mxu1 }
 0x1ba   : > { %v4236_v17 = vpop.f32.mrf.mxu1 }
 0x1bc   : > { %v4238_v0 = vpop.f32.mrf.mxu1 }
 0x1be   : > { %v4240_v56 = vpop.f32.mrf.mxu1 }
 0x1bf   : > { %v2782_v32 = vpop.f32.mrf.mxu0 }
 0x1c0   : > { %v2830_v34 = vpop.f32.mrf.mxu1 }
 0x1c1   : > { %v1187_v15 = vadd.f32 %v2830_v34, %v4245_v19  ;;  %v946_v54 = vpop.f32.mrf.mxu0 }
 0x1c2   : > { %v1178_v47 = vpop.f32.mrf.mxu1 }
 0x1c3   : > { %v1339_v20 = vmul.f32 0.70710677, %v1187_v15  ;;  %v1179_v55 = vadd.f32 %v4245_v19, %v1178_v47  ;;  %v2783_v58 = vpop.f32.mrf.mxu0 }
 0x1c4   : > { %v2831_v2 = vpop.f32.mrf.mxu1  ;;  %v958_v41 = vadd.f32 %v2783_v58, %v4257_v11 }
 0x1c5   : > { %v1337_v61 = vmul.f32 0.70710677, %v1179_v55  ;;  %v1190_v36 = vadd.f32 %v2831_v2, %v4245_v19  ;;  %v949_v16 = vpop.f32.mrf.mxu0  ;;  %3169 = verf.f32 %v1339_v20 }
 0x1c6   : > { %v1181_v33 = vpop.f32.mrf.mxu1 }
 0x1c7   : > { %3171 = verf.f32 %v1337_v61  ;;  %v1340_v24 = vmul.f32 0.70710677, %v1190_v36  ;;  %v1182_v21 = vadd.f32 %v4245_v19, %v1181_v33  ;;  %v2786_v63 = vpop.f32.mrf.mxu0  ;;  %v1308_v46 = vmul.f32 0.5, %v1190_v36 }
 0x1c8   : > { %v2834_v50 = vpop.f32.mrf.mxu1  ;;  %v4280_v29 = vadd.f32 %v2786_v63, %v4257_v11 }
 0x1c9   : > { %3173 = verf.f32 %v1340_v24  ;;  %v1338_v5 = vmul.f32 0.70710677, %v1182_v21  ;;  %v1203_v28 = vadd.f32 %v2834_v50, %v4245_v19  ;;  %v962_v25 = vpop.f32.mrf.mxu0  ;;  %v4262_v24 = vadd.f32 %v2798_v44, %v4257_v11 }
 0x1ca   : > { %v1194_v18 = vpop.f32.mrf.mxu1  ;;  %v4265_v50 = vadd.f32 %v4257_v11, %v1010_v7  ;;  %v4274_v44 = vadd.f32 %v4257_v11, %v949_v16  ;;  %v1306_v58 = vmul.f32 0.5, %v1182_v21  ;;  %v4289_v36 = vadd.f32 %v4257_v11, %v962_v25 }
 0x1cb   : > { %3175 = verf.f32 %v1338_v5  ;;  %v1195_v23 = vadd.f32 %v4245_v19, %v1194_v18  ;;  %v2787_v3 = vpop.f32.mrf.mxu0  ;;  %v1343_v30 = vmul.f32 0.70710677, %v1203_v28  ;;  %v4268_v5 = vadd.f32 %v2799_v13, %v4257_v11 }
 0x1cc   : > { %v2835_v8 = vpop.f32.mrf.mxu1  ;;  %v4292_v63 = vadd.f32 %v2787_v3, %v4257_v11 }
 0x1cd   : > { %v1341_v62 = vmul.f32 0.70710677, %v1195_v23  ;;  %v1206_v42 = vadd.f32 %v2835_v8, %v4245_v19  ;;  %v965_v52 = vpop.f32.mrf.mxu0  ;;  %v1309_v38 = vmul.f32 0.5, %v1195_v23 }
 0x1ce   : > { %v1197_v53 = vpop.f32.mrf.mxu1 }
 0x1cf   : > { %3177 = verf.f32 %v1341_v62  ;;  %v1344_v31 = vmul.f32 0.70710677, %v1206_v42  ;;  %v1198_v34 = vadd.f32 %v4245_v19, %v1197_v53  ;;  %v2790_v47 = vpop.f32.mrf.mxu0  ;;  %v955_v62 = vadd.f32 %v2782_v32, %v4257_v11 }
 0x1d0   : > { %3179 = verf.f32 %v1343_v30  ;;  %v2838_v20 = vpop.f32.mrf.mxu1  ;;  %v1307_v30 = vmul.f32 0.5, %v1187_v15  ;;  %v947_v53 = vadd.f32 %v4257_v11, %v946_v54  ;;  %v1312_v37 = vmul.f32 0.5, %v1206_v42 }
 0x1d1   : > { %3181 = verf.f32 %v1344_v31  ;;  %v1342_v2 = vmul.f32 0.70710677, %v1198_v34  ;;  %v1219_v61 = vadd.f32 %v2838_v20, %v4245_v19  ;;  %v978_v33 = vpop.f32.mrf.mxu0  ;;  %v1305_v20 = vmul.f32 0.5, %v1179_v55 }
 0x1d2   : > { %v1210_v18 = vpop.f32.mrf.mxu1  ;;  %v3170_v8 = vpop.eup %3169  ;;  %v4306_v40 = vadd.f32 %v2790_v47, %v4257_v11 }
 0x1d3   : > { %3183 = verf.f32 %v1342_v2  ;;  %v4277_v7 = vadd.f32 %v4245_v19, %v1210_v18  ;;  %v1347_v32 = vmul.f32 0.70710677, %v1219_v61  ;;  %v2791_v15 = vpop.f32.mrf.mxu0  ;;  %v1403_v55 = vadd.f32 1.0, %v3170_v8 }
 0x1d4   : > { %v3172_v31 = vpop.eup %3171  ;;  %v2839_v13 = vpop.f32.mrf.mxu1  ;;  %v4286_v18 = vmul.f32 0.5, %v1203_v28 }
 0x1d5   : > { %v4283_v54 = vadd.f32 %v2839_v13, %v4245_v19  ;;  %v1401_v35 = vadd.f32 1.0, %v3172_v31  ;;  %v1345_v16 = vmul.f32 0.70710677, %v4277_v7  ;;  %v981_v28 = vpop.f32.mrf.mxu0  ;;  %v1435_v3 = vmul.f32 %v1403_v55, %v1307_v30 }
 0x1d6   : > { %v3174_v2 = vpop.eup %3173  ;;  %v1213_v27 = vpop.f32.mrf.mxu1  ;;  %v4312_v55 = vmul.f32 0.5, %v1219_v61 }
 0x1d7   : > { %v1404_v1 = vadd.f32 1.0, %v3174_v2  ;;  %3185 = verf.f32 %v1345_v16  ;;  %v1348_v13 = vmul.f32 0.70710677, %v4283_v54  ;;  %v4296_v8 = vadd.f32 %v4245_v19, %v1213_v27 }
 0x1d8   : > { %v3176_v10 = vpop.eup %3175  ;;  %v2842_v21 = vpop.f32.mrf.mxu1  ;;  %v4299_v2 = vadd.f32 %v4257_v11, %v965_v52  ;;  %3187 = verf.f32 %v1347_v32  ;;  %v1433_v43 = vmul.f32 %v1401_v35, %v1305_v20  ;;  %v1310_v27 = vmul.f32 0.5, %v1198_v34 }
 0x1d9   : > { %v1402_v31 = vadd.f32 1.0, %v3176_v10  ;;  %v4302_v25 = vadd.f32 %v2842_v21, %v4245_v19  ;;  %3189 = verf.f32 %v1348_v13  ;;  %v1346_v23 = vmul.f32 0.70710677, %v4296_v8 }
 0x1da   : > { %v1226_v16 = vpop.f32.mrf.mxu1  ;;  %v1436_v57 = vmul.f32 %v1404_v1, %v1308_v46  ;;  %v4315_v1 = vadd.f32 %v4257_v11, %v978_v33  ;;  %v2794_v46 = vpop.f32.mrf.mxu0  ;;  %v1467_v47 = vmul.f32 %v1435_v3, %v955_v62 }
 0x1db   : > { %v1434_v52 = vmul.f32 %v1402_v31, %v1306_v58  ;;  %3191 = verf.f32 %v1346_v23  ;;  %v1351_v32 = vmul.f32 0.70710677, %v4302_v25  ;;  %v4310_v21 = vadd.f32 %v4245_v19, %v1226_v16 }
 0x1dc   : > { %v3178_v10 = vpop.eup %3177  ;;  %v2843_v30 = vpop.f32.mrf.mxu1  ;;  %v4321_v58 = vadd.f32 %v2791_v15, %v4257_v11  ;;  %v1465_v23 = vmul.f32 %v1433_v43, %v947_v53  ;;  %v1468_v16 = vmul.f32 %v1436_v57, %v958_v41  ;;  %v1313_v41 = vmul.f32 0.5, %v4277_v7 }
 0x1dd   : > { %v3180_v35 = vpop.eup %3179  ;;  %v1405_v20 = vadd.f32 1.0, %v3178_v10  ;;  %v4318_v42 = vadd.f32 %v2843_v30, %v4245_v19  ;;  %v1349_v13 = vmul.f32 0.70710677, %v4310_v21  ;;  %3193 = verf.f32 %v1351_v32  ;;  %v994_v4 = vpop.f32.mrf.mxu0 }
 0x1de   : > { %v3182_v34 = vpop.eup %3181  ;;  %v1229_v31 = vpop.f32.mrf.mxu1  ;;  %v1407_v49 = vadd.f32 1.0, %v3180_v35  ;;  %v1466_v62 = vmul.f32 %v1434_v52, %v4274_v44  ;;  %v1316_v52 = vmul.f32 0.5, %v4283_v54  ;;  %v4349_v54 = vadd.f32 %v2794_v46, %v4257_v11 }
 0x1df   : > { %v1408_v10 = vadd.f32 1.0, %v3182_v34  ;;  %v1352_v61 = vmul.f32 0.70710677, %v4318_v42  ;;  %3195 = verf.f32 %v1349_v13  ;;  %v4326_v30 = vadd.f32 %v4245_v19, %v1229_v31 }
 0x1e0   : > { %v3184_v33 = vpop.eup %3183  ;;  %v2846_v22 = vpop.f32.mrf.mxu1  ;;  %v1437_v15 = vmul.f32 %v1405_v20, %v1309_v38  ;;  %v1497_v32 = vpack.c.bf16 %v1466_v62, %v1465_v23  ;;  %v1498_v34 = vpack.c.bf16 %v1468_v16, %v1467_v47  ;;  %v4335_v31 = vadd.f32 %v4257_v11, %v981_v28 }
 0x1e1   : > { %v1406_v3 = vadd.f32 1.0, %v3184_v33  ;;  %3197 = verf.f32 %v1352_v61  ;;  %v4330_v43 = vadd.f32 %v2846_v22, %v4245_v19  ;;  %v1440_v57 = vmul.f32 %v1408_v10, %v1312_v37  ;;  %v2795_v20 = vpop.f32.mrf.mxu0 }
 0x1e2   : > { %v1350_v53 = vmul.f32 0.70710677, %v4326_v30  ;;  %v1242_v35 = vpop.f32.mrf.mxu1  ;;  %v1439_v44 = vmul.f32 %v1407_v49, %v4286_v18  ;;  %2876 = vmatprep.mubr.bf16.mxu0 %v1497_v32  ;;  %v1469_v28 = vmul.f32 %v1437_v15, %v4289_v36  ;;  %v1314_v33 = vmul.f32 0.5, %v4296_v8 }
 0x1e3   : > { %v1438_v13 = vmul.f32 %v1406_v3, %v1310_v27  ;;  %v1355_v38 = vmul.f32 0.70710677, %v4330_v43  ;;  %v4341_v22 = vadd.f32 %v4245_v19, %v1242_v35  ;;  %2877 = vmatmul.mubr.bf16.vlgmr.msra.gmra.mxu0 %v1498_v34  ;;  %v1472_v10 = vmul.f32 %v1440_v57, %v4292_v63  ;;  %v997_v63 = vpop.f32.mrf.mxu0 }
 0x1e4   : > { %3199 = verf.f32 %v1350_v53  ;;  %v2847_v37 = vpop.f32.mrf.mxu1  ;;  %v3186_v7 = vpop.eup %3185  ;;  %v4359_v15 = vadd.f32 %v4257_v11, %v994_v4  ;;  %v1471_v53 = vmul.f32 %v1439_v44, %v4280_v29 }
 0x1e5   : > { %3201 = verf.f32 %v1355_v38  ;;  %v4344_v27 = vadd.f32 %v2847_v37, %v4245_v19  ;;  %v1470_v47 = vmul.f32 %v1438_v13, %v4299_v2  ;;  %v3188_v49 = vpop.eup %3187  ;;  %v1409_v18 = vadd.f32 1.0, %v3186_v7 }
 0x1e6   : > { %v1353_v23 = vmul.f32 0.70710677, %v4341_v22  ;;  %v1245_v16 = vpop.f32.mrf.mxu1  ;;  %v3190_v61 = vpop.eup %3189  ;;  %v1411_v35 = vadd.f32 1.0, %v3188_v49  ;;  %v1319_v38 = vmul.f32 0.5, %v4302_v25  ;;  %v1500_v37 = vpack.c.bf16 %v1472_v10, %v1471_v53 }
 0x1e7   : > { %v1356_v62 = vmul.f32 0.70710677, %v4344_v27  ;;  %v4356_v3 = vadd.f32 %v4245_v19, %v1245_v16  ;;  %v1499_v36 = vpack.c.bf16 %v1470_v47, %v1469_v28  ;;  %v1412_v2 = vadd.f32 1.0, %v3190_v61 }
 0x1e8   : > { %3203 = verf.f32 %v1353_v23  ;;  %v2850_v46 = vpop.f32.mrf.mxu1  ;;  %v3192_v32 = vpop.eup %3191  ;;  %v1441_v34 = vmul.f32 %v1409_v18, %v1313_v41  ;;  %v1317_v49 = vmul.f32 0.5, %v4310_v21  ;;  %v1006_v23 = vadd.f32 %v2795_v20, %v4257_v11 }
 0x1e9   : > { %3205 = verf.f32 %v1356_v62  ;;  %v1354_v8 = vmul.f32 0.70710677, %v4356_v3  ;;  %v4364_v57 = vadd.f32 %v2850_v46, %v4245_v19  ;;  %2880 = vmatprep.mubr.bf16.mxu0 %v1499_v36  ;;  %v1410_v13 = vadd.f32 1.0, %v3192_v32 }
 0x1ea   : > { %v1258_v4 = vpop.f32.mrf.mxu1  ;;  %v1444_v7 = vmul.f32 %v1412_v2, %v1316_v52  ;;  %v3194_v28 = vpop.eup %3193  ;;  %v998_v41 = vadd.f32 %v4257_v11, %v997_v63  ;;  %v1443_v25 = vmul.f32 %v1411_v35, %v4312_v55  ;;  %v1473_v20 = vmul.f32 %v1441_v34, %v4315_v1 }
 0x1eb   : > { %3207 = verf.f32 %v1354_v8  ;;  %v1359_v29 = vmul.f32 0.70710677, %v4364_v57  ;;  %v4369_v44 = vadd.f32 %v4245_v19, %v1258_v4  ;;  %v1442_v47 = vmul.f32 %v1410_v13, %v1314_v33  ;;  %2881 = vmatmul.mubr.bf16.gmra.mxu0 %v1500_v37 }
 0x1ec   : > { %v2851_v18 = vpop.f32.mrf.mxu1  ;;  %v3196_v16 = vpop.eup %3195  ;;  %v1320_v33 = vmul.f32 0.5, %v4318_v42  ;;  %v1476_v46 = vmul.f32 %v1444_v7, %v4321_v58  ;;  %v1415_v53 = vadd.f32 1.0, %v3194_v28  ;;  %v1318_v32 = vmul.f32 0.5, %v4326_v30 }
 0x1ed   : > { %3209 = verf.f32 %v1359_v29  ;;  %v1357_v52 = vmul.f32 0.70710677, %v4369_v44  ;;  %v4377_v10 = vadd.f32 %v2851_v18, %v4245_v19  ;;  %v1413_v62 = vadd.f32 1.0, %v3196_v16 }
 0x1ee   : > { %v3198_v61 = vpop.eup %3197  ;;  %v1261_v21 = vpop.f32.mrf.mxu1  ;;  %v1474_v36 = vmul.f32 %v1442_v47, %v4335_v31  ;;  %v1475_v31 = vmul.f32 %v1443_v25, %v4306_v40  ;;  %v1323_v58 = vmul.f32 0.5, %v4330_v43  ;;  %v1321_v29 = vmul.f32 0.5, %v4341_v22 }
 0x1ef   : > { %v1416_v2 = vadd.f32 1.0, %v3198_v61  ;;  %3211 = verf.f32 %v1357_v52  ;;  %v1360_v55 = vmul.f32 0.70710677, %v4377_v10  ;;  %v4386_v35 = vadd.f32 %v4245_v19, %v1261_v21 }
 0x1f0   : > { %v2854_v63 = vpop.f32.mrf.mxu1  ;;  %v1501_v8 = vpack.c.bf16 %v1474_v36, %v1473_v20  ;;  %v1445_v13 = vmul.f32 %v1413_v62, %v1317_v49  ;;  %v1502_v49 = vpack.c.bf16 %v1476_v46, %v1475_v31  ;;  %v1447_v18 = vmul.f32 %v1415_v53, %v1319_v38 }
 0x1f1   : > { %v3200_v42 = vpop.eup %3199  ;;  %3213 = verf.f32 %v1360_v55  ;;  %v4389_v1 = vadd.f32 %v2854_v63, %v4245_v19  ;;  %v1448_v4 = vmul.f32 %v1416_v2, %v1320_v33  ;;  %v1358_v30 = vmul.f32 0.70710677, %v4386_v35 }
 0x1f2   : > { %v3202_v34 = vpop.eup %3201  ;;  %v1414_v37 = vadd.f32 1.0, %v3200_v42  ;;  %2884 = vmatprep.mubr.bf16.mxu0 %v1501_v8  ;;  %v1274_v7 = vpop.f32.mrf.mxu1  ;;  %v1324_v43 = vmul.f32 0.5, %v4344_v27  ;;  %v1477_v22 = vmul.f32 %v1445_v13, %v4359_v15  ;;  %v1322_v55 = vmul.f32 0.5, %v4356_v3 }
 0x1f3   : > { %v1363_v28 = vmul.f32 0.70710677, %v4389_v1  ;;  %v4397_v47 = vadd.f32 %v4245_v19, %v1274_v7  ;;  %v1419_v40 = vadd.f32 1.0, %v3202_v34  ;;  %3215 = verf.f32 %v1358_v30  ;;  %2885 = vmatmul.mubr.bf16.gmra.mxu0 %v1502_v49 }
 0x1f4   : > { %v1446_v16 = vmul.f32 %v1414_v37, %v1318_v32  ;;  %v2855_v25 = vpop.f32.mrf.mxu1  ;;  %v1480_v36 = vmul.f32 %v1448_v4, %v1006_v23  ;;  %v1479_v8 = vmul.f32 %v1447_v18, %v4349_v54  ;;  %v1014_v3 = vadd.f32 %v4257_v11, %v4216_v12 }
 0x1f5   : > { %v3204_v52 = vpop.eup %3203  ;;  %3217 = verf.f32 %v1363_v28  ;;  %v1361_v61 = vmul.f32 0.70710677, %v4397_v47  ;;  %v4403_v21 = vadd.f32 %v2855_v25, %v4245_v19  ;;  %v1451_v53 = vmul.f32 %v1419_v40, %v1323_v58 }
 0x1f6   : > { %v3206_v62 = vpop.eup %3205  ;;  %v1417_v33 = vadd.f32 1.0, %v3204_v52  ;;  %v1277_v20 = vpop.f32.mrf.mxu1  ;;  %v1478_v38 = vmul.f32 %v1446_v16, %v998_v41  ;;  %v1504_v37 = vpack.c.bf16 %v1480_v36, %v1479_v8  ;;  %v1328_v40 = vmul.f32 0.5, %v4377_v10 }
 0x1f7   : > { %v1420_v2 = vadd.f32 1.0, %v3206_v62  ;;  %3219 = verf.f32 %v1361_v61  ;;  %v4407_v27 = vadd.f32 %v4245_v19, %v1277_v20  ;;  %v1364_v32 = vmul.f32 0.70710677, %v4403_v21 }
 0x1f8   : > { %v3208_v46 = vpop.eup %3207  ;;  %v2858_v15 = vpop.f32.mrf.mxu1  ;;  %v1503_v63 = vpack.c.bf16 %v1478_v38, %v1477_v22  ;;  %v1449_v42 = vmul.f32 %v1417_v33, %v1321_v29  ;;  %v1327_v29 = vmul.f32 0.5, %v4364_v57  ;;  %v1483_v12 = vmul.f32 %v1451_v53, %v4262_v24 }
 0x1f9   : > { %v1452_v13 = vmul.f32 %v1420_v2, %v1324_v43  ;;  %v1418_v31 = vadd.f32 1.0, %v3208_v46  ;;  %v1362_v23 = vmul.f32 0.70710677, %v4407_v27  ;;  %3221 = verf.f32 %v1364_v32 }
 0x1fa   : > { %v3210_v41 = vpop.eup %3209  ;;  %v4415_v34 = vadd.f32 %v2858_v15, %v4245_v19  ;;  %2888 = vmatprep.mubr.bf16.mxu0 %v1503_v63  ;;  %v1290_v4 = vpop.f32.mrf.mxu1  ;;  %v1481_v52 = vmul.f32 %v1449_v42, %v4265_v50  ;;  %v1325_v10 = vmul.f32 0.5, %v4369_v44  ;;  %v1035_v36 = vadd.f32 %v4218_v9, %v4257_v11 }
 0x1fb   : > { %v1450_v58 = vmul.f32 %v1418_v31, %v1322_v55  ;;  %v1423_v30 = vadd.f32 1.0, %v3210_v41  ;;  %3223 = verf.f32 %v1362_v23  ;;  %v4418_v54 = vadd.f32 %v4245_v19, %v1290_v4  ;;  %2889 = vmatmul.mubr.bf16.gmra.mxu0 %v1504_v37 }
 0x1fc   : > { %v3212_v7 = vpop.eup %3211  ;;  %v1367_v28 = vmul.f32 0.70710677, %v4415_v34  ;;  %v2859_v49 = vpop.f32.mrf.mxu1  ;;  %v1484_v18 = vmul.f32 %v1452_v13, %v4268_v5  ;;  %v1038_v2 = vadd.f32 %v4222_v14, %v4257_v11  ;;  %v1027_v9 = vadd.f32 %v4257_v11, %v4220_v6 }
 0x1fd   : > { %v1421_v16 = vadd.f32 1.0, %v3212_v7  ;;  %v1365_v25 = vmul.f32 0.70710677, %v4418_v54  ;;  %v4428_v61 = vadd.f32 %v2859_v49, %v4245_v19  ;;  %v1482_v22 = vmul.f32 %v1450_v58, %v1014_v3 }
 0x1fe   : > { %v3214_v43 = vpop.eup %3213  ;;  %3225 = verf.f32 %v1367_v28  ;;  %v1293_v57 = vpop.f32.mrf.mxu1  ;;  %v1506_v62 = vpack.c.bf16 %v1484_v18, %v1483_v12  ;;  %v1455_v33 = vmul.f32 %v1423_v30, %v1327_v29  ;;  %v1030_v14 = vadd.f32 %v4257_v11, %v4224_v45 }
 0x1ff   : > { %v1424_v24 = vadd.f32 1.0, %v3214_v43  ;;  %3227 = verf.f32 %v1365_v25  ;;  %v4431_v5 = vadd.f32 %v4245_v19, %v1293_v57  ;;  %v1368_v20 = vmul.f32 0.70710677, %v4428_v61 }
 0x200   : > { %v1505_v38 = vpack.c.bf16 %v1482_v22, %v1481_v52  ;;  %v3216_v50 = vpop.eup %3215  ;;  %v1453_v32 = vmul.f32 %v1421_v16, %v1325_v10  ;;  %v1326_v19 = vmul.f32 0.5, %v4386_v35  ;;  %v1487_v44 = vmul.f32 %v1455_v33, %v1035_v36 }
 0x201   : > { %v1456_v55 = vmul.f32 %v1424_v24, %v1328_v40  ;;  %v1366_v46 = vmul.f32 0.70710677, %v4431_v5  ;;  %v1422_v15 = vadd.f32 1.0, %v3216_v50  ;;  %3229 = verf.f32 %v1368_v20 }
 0x202   : > { %v3218_v53 = vpop.eup %3217  ;;  %2892 = vmatprep.mubr.bf16.mxu0 %v1505_v38  ;;  %v1331_v35 = vmul.f32 0.5, %v4389_v1  ;;  %v1485_v41 = vmul.f32 %v1453_v32, %v1027_v9  ;;  %v1329_v37 = vmul.f32 0.5, %v4397_v47  ;;  %v1332_v7 = vmul.f32 0.5, %v4403_v21 }
 0x203   : > { %3231 = verf.f32 %v1366_v46  ;;  %v1488_v63 = vmul.f32 %v1456_v55, %v1038_v2  ;;  %v1454_v42 = vmul.f32 %v1422_v15, %v1326_v19  ;;  %v1427_v13 = vadd.f32 1.0, %v3218_v53  ;;  %2893 = vmatmul.mubr.bf16.gmra.mxu0 %v1506_v62 }
 0x204   : > { %v3220_v8 = vpop.eup %3219  ;;  %v1330_v45 = vmul.f32 0.5, %v4407_v27  ;;  %v1051_v12 = vadd.f32 %v4226_v51, %v4257_v11  ;;  %v1054_v1 = vadd.f32 %v4230_v48, %v4257_v11  ;;  %v1043_v47 = vadd.f32 %v4257_v11, %v4228_v39 }
 0x205   : > { %v1425_v31 = vadd.f32 1.0, %v3220_v8  ;;  %v1508_v23 = vpack.c.bf16 %v1488_v63, %v1487_v44  ;;  %v1486_v3 = vmul.f32 %v1454_v42, %v1030_v14  ;;  %v1459_v30 = vmul.f32 %v1427_v13, %v1331_v35 }
 0x206   : > { %v3222_v4 = vpop.eup %3221  ;;  %v1046_v21 = vadd.f32 %v4257_v11, %v4232_v59  ;;  %v1335_v48 = vmul.f32 0.5, %v4415_v34  ;;  %v1333_v24 = vmul.f32 0.5, %v4418_v54  ;;  %v1336_v59 = vmul.f32 0.5, %v4428_v61 }
 0x207   : > { %v1428_v6 = vadd.f32 1.0, %v3222_v4  ;;  %v1507_v29 = vpack.c.bf16 %v1486_v3, %v1485_v41  ;;  %v1457_v28 = vmul.f32 %v1425_v31, %v1329_v37  ;;  %v1491_v27 = vmul.f32 %v1459_v30, %v1051_v12 }
 0x208   : > { %v3224_v58 = vpop.eup %3223  ;;  %v1334_v36 = vmul.f32 0.5, %v4431_v5  ;;  %v1067_v55 = vadd.f32 %v4234_v26, %v4257_v11  ;;  %v1070_v34 = vadd.f32 %v4238_v0, %v4257_v11  ;;  %v1059_v54 = vadd.f32 %v4257_v11, %v4236_v17  ;;  %v4469_v26 = vpop.permute.xlu0 %2118 }
 0x209   : > { %v1426_v49 = vadd.f32 1.0, %v3224_v58  ;;  %v1460_v18 = vmul.f32 %v1428_v6, %v1332_v7  ;;  %2896 = vmatprep.mubr.bf16.mxu0 %v1507_v29  ;;  %v1489_v51 = vmul.f32 %v1457_v28, %v1043_v47  ;;  %v1062_v53 = vadd.f32 %v4257_v11, %v4240_v56  ;;  %v4471_v0 = vpop.permute.xlu1 %2123 }
 0x20b   : > { %v3226_v16 = vpop.eup %3225  ;;  %v1458_v40 = vmul.f32 %v1426_v49, %v1330_v45  ;;  %v1492_v43 = vmul.f32 %v1460_v18, %v1054_v1  ;;  %2897 = vmatmul.mubr.bf16.gmra.mxu0 %v1508_v23  ;;  %v4507_v18 = vld [vmem:[%s4704_s7] ss:$0 sm:$0xff] }
 0x20c   : > { %v3228_v25 = vpop.eup %3227  ;;  %v1431_v52 = vadd.f32 1.0, %v3226_v16  ;;  %v4473_v8 = vpop.permute.xlu0 %2128 }
 0x20d   : > { %v1429_v57 = vadd.f32 1.0, %v3228_v25  ;;  %v1490_v22 = vmul.f32 %v1458_v40, %v1046_v21  ;;  %v1510_v62 = vpack.c.bf16 %v1492_v43, %v1491_v27  ;;  %v4475_v17 = vpop.permute.xlu1 %2133 }
 0x20e   : > { %v3230_v33 = vpop.eup %3229  ;;  %v1463_v20 = vmul.f32 %v1431_v52, %v1335_v48 }
 0x20f   : > { %v1509_v10 = vpack.c.bf16 %v1490_v22, %v1489_v51  ;;  %v1432_v38 = vadd.f32 1.0, %v3230_v33  ;;  %v1461_v50 = vmul.f32 %v1429_v57, %v1333_v24 }
 0x210   : > { %v3232_v39 = vpop.eup %3231  ;;  %v1495_v32 = vmul.f32 %v1463_v20, %v1067_v55  ;;  %v4477_v9 = vpop.permute.xlu0 %2138  ;;  %v4828_v55 = vld [vmem:[#allocation29_spill] sm:$0xff] }
 0x211   : > { %v1430_v2 = vadd.f32 1.0, %v3232_v39  ;;  %2900 = vmatprep.mubr.bf16.mxu0 %v1509_v10  ;;  %v1464_v46 = vmul.f32 %v1432_v38, %v1336_v59  ;;  %v1493_v5 = vmul.f32 %v1461_v50, %v1059_v54  ;;  %v4479_v56 = vpop.permute.xlu1 %2143 }
 0x213   : > { %v1462_v61 = vmul.f32 %v1430_v2, %v1334_v36  ;;  %v1496_v19 = vmul.f32 %v1464_v46, %v1070_v34  ;;  %2901 = vmatmul.mubr.bf16.gmra.mxu0 %v1510_v62  ;;  %v4826_v62 = vld [vmem:[#allocation30_spill] sm:$0xff] }
 0x214   : > { %v4481_v11 = vpop.permute.xlu0 %2148 }
 0x215   : > { %v1494_v15 = vmul.f32 %v1462_v61, %v1062_v53  ;;  %v1512_v44 = vpack.c.bf16 %v1496_v19, %v1495_v32  ;;  %v4483_v14 = vpop.permute.xlu1 %2153  ;;  %v4829_v61 = vld [vmem:[#allocation35_spill] sm:$0xff] }
 0x217   : > { %v1511_v63 = vpack.c.bf16 %v1494_v15, %v1493_v5 }
 0x218   : > { %v4485_v42 = vpop.permute.xlu0 %2158 }
 0x219   : > { %2904 = vmatprep.mubr.bf16.mxu0 %v1511_v63  ;;  %v4487_v13 = vpop.permute.xlu1 %2163  ;;  %v4830_v63 = vld [vmem:[#allocation33_spill] sm:$0xff] }
 0x21b   : > { %2905 = vmatmul.mubr.bf16.gmra.mxu0 %v1512_v44 }
 0x21c   : > { %v4489_v31 = vpop.permute.xlu0 %2168 }
 0x21d   : > { %v4491_v23 = vpop.permute.xlu1 %2173 }
 0x220   : > { %v4493_v35 = vpop.permute.xlu0 %2178 }
 0x221   : > { %v4495_v41 = vpop.permute.xlu1 %2183 }
 0x224   : > { %v4497_v3 = vpop.permute.xlu0 %2188 }
 0x225   : > { %v4499_v4 = vpop.permute.xlu1 %2193 }
 0x228   : > { %v2231_v37 = vpop.permute.xlu0 %2230 }
 0x229   : > { %v2236_v58 = vpop.permute.xlu1 %2235 }
 0x22c   : > { %v2241_v30 = vpop.permute.xlu0 %2240 }
 0x22d   : > { %v2246_v7 = vpop.permute.xlu1 %2245 }
 0x230   : > { %v2251_v6 = vpop.permute.xlu0 %2250 }
 0x231   : > { %v2256_v29 = vpop.permute.xlu1 %2255 }
 0x234   : > { %v2261_v28 = vpop.permute.xlu0 %2260 }
 0x235   : > { %v2266_v45 = vpop.permute.xlu1 %2265 }
 0x238   : > { %v2271_v49 = vpop.permute.xlu0 %2270 }
 0x239   : > { %v4501_v12 = vpop.permute.xlu1 %2275 }
 0x23c   : > { %v2281_v1 = vpop.permute.xlu0 %2280 }
 0x23d   : > { %v2286_v21 = vpop.permute.xlu1 %2285 }
 0x240   : > { %v4513_v27 = vpop.permute.xlu0 %2290 }
 0x241   : > { %v4522_v39 = vpop.permute.xlu1 %2295 }
 0x244   : > { %v2301_v36 = vpop.permute.xlu0 %2300 }
 0x245   : > { %v2306_v15 = vpop.permute.xlu1 %2305 }
 0x2a3   : > { %v2878_v16 = vpop.f32.mrf.mxu0 }
 0x2a4   : > { %v2006_v47 = vadd.f32 %v2878_v16, %v4507_v18  ;;  %v4831_v16 = vld [vmem:[#allocation34_spill] sm:$0xff] }
 0x2a5   : > { %v1643_v40 = vpop.f32.mrf.mxu0 }
 0x2a6   : > { %v2390_v25 = vmul.f32 %v2241_v30, %v2006_v47  ;;  %v2004_v52 = vadd.f32 %v4507_v18, %v1643_v40 }
 0x2a7   : > { %v2879_v43 = vpop.f32.mrf.mxu0 }
 0x2a8   : > { %v2422_v57 = vadd.f32 %v2390_v25, %v4173_v60  ;;  %v2388_v51 = vmul.f32 %v2231_v37, %v2004_v52  ;;  %v2007_v22 = vadd.f32 %v2879_v43, %v4507_v18  ;;  %v4827_v60 = vld [vmem:[#allocation31_spill] sm:$0xff]  ;;  %v4832_v52 = vld [vmem:[#allocation32_spill] sm:$0xff] }
 0x2a9   : > { %v1646_v48 = vpop.f32.mrf.mxu0 }
 0x2aa   : > { %2454 = vst [vmem:[%s4517_s12 + $0x10] sm:$0xff] %v2422_v57  ;;  %v2420_v33 = vadd.f32 %v2388_v51, %v4826_v62  ;;  %v2391_v24 = vmul.f32 %v2246_v7, %v2007_v22  ;;  %v2005_v10 = vadd.f32 %v4507_v18, %v1646_v48  ;;  %v4536_v7 = vpop.permute.xlu0 %2310  ;;  %v4544_v51 = vpop.permute.xlu1 %2315  ;;  %v4833_v48 = vld [vmem:[#allocation16_spill] sm:$0xff] }
 0x2ab   : > { %v2882_v20 = vpop.f32.mrf.mxu0 }
 0x2ac   : > { %2452 = vst [vmem:[%s4517_s12] sm:$0xff] %v2420_v33  ;;  %v2423_v59 = vadd.f32 %v2391_v24, %v4827_v60  ;;  %v2389_v38 = vmul.f32 %v2236_v58, %v2005_v10  ;;  %v2010_v50 = vadd.f32 %v2882_v20, %v4507_v18  ;;  %v4834_v20 = vld [vmem:[#allocation39_spill] sm:$0xff] }
 0x2ad   : > { %v1659_v2 = vpop.f32.mrf.mxu0 }
 0x2ae   : > { %2455 = vst [vmem:[%s4517_s12 + $0x18] sm:$0xff] %v2423_v59  ;;  %v2421_v34 = vadd.f32 %v2389_v38, %v4828_v55  ;;  %v2394_v46 = vmul.f32 %v2261_v28, %v2010_v50  ;;  %v2008_v54 = vadd.f32 %v4507_v18, %v1659_v2  ;;  %v2321_v24 = vpop.permute.xlu0 %2320  ;;  %v4835_v50 = vld [vmem:[#allocation40_spill] sm:$0xff] }
 0x2af   : > { %v2883_v53 = vpop.f32.mrf.mxu0 }
 0x2b0   : > { %2453 = vst [vmem:[%s4517_s12 + $0x8] sm:$0xff] %v2421_v34  ;;  %v2426_v32 = vadd.f32 %v2394_v46, %v4829_v61  ;;  %v2392_v19 = vmul.f32 %v2251_v6, %v2008_v54  ;;  %v2011_v5 = vadd.f32 %v2883_v53, %v4507_v18  ;;  %v2326_v34 = vpop.permute.xlu1 %2325  ;;  %v4836_v54 = vld [vmem:[#allocation37_spill] sm:$0xff] }
 0x2b1   : > { %v1662_v44 = vpop.f32.mrf.mxu0 }
 0x2b2   : > { %2458 = vst [vmem:[%s4517_s12 + $0x30] sm:$0xff] %v2426_v32  ;;  %v2424_v37 = vadd.f32 %v2392_v19, %v4830_v63  ;;  %v2395_v58 = vmul.f32 %v2266_v45, %v2011_v5  ;;  %v2009_v30 = vadd.f32 %v4507_v18, %v1662_v44  ;;  %v2331_v32 = vpop.permute.xlu0 %2330  ;;  %v4837_v5 = vld [vmem:[#allocation17_spill] sm:$0xff] }
 0x2b3   : > { %v2886_v28 = vpop.f32.mrf.mxu0 }
 0x2b4   : > { %2456 = vst [vmem:[%s4517_s12 + $0x20] sm:$0xff] %v2424_v37  ;;  %v2427_v47 = vadd.f32 %v2395_v58, %v4831_v16  ;;  %v2393_v40 = vmul.f32 %v2256_v29, %v2009_v30  ;;  %v2014_v6 = vadd.f32 %v2886_v28, %v4507_v18  ;;  %v4838_v58 = vld [vmem:[#allocation15_spill] sm:$0xff]  ;;  %v4566_v16 = vpop.permute.xlu1 %2335 }
 0x2b5   : > { %v1675_v25 = vpop.f32.mrf.mxu0 }
 0x2b6   : > { %2459 = vst [vmem:[%s4517_s12 + $0x38] sm:$0xff] %v2427_v47  ;;  %v2425_v43 = vadd.f32 %v2393_v40, %v4832_v52  ;;  %v2398_v57 = vmul.f32 %v2281_v1, %v2014_v6  ;;  %v2012_v45 = vadd.f32 %v4507_v18, %v1675_v25  ;;  %v4839_v40 = vld [vmem:[#allocation13_spill] sm:$0xff]  ;;  %v2341_v52 = vpop.permute.xlu0 %2340 }
 0x2b7   : > { %v2887_v22 = vpop.f32.mrf.mxu0 }
 0x2b8   : > { %2457 = vst [vmem:[%s4517_s12 + $0x28] sm:$0xff] %v2425_v43  ;;  %v2430_v62 = vadd.f32 %v2398_v57, %v4833_v48  ;;  %v2396_v33 = vmul.f32 %v2271_v49, %v2012_v45  ;;  %v2015_v29 = vadd.f32 %v2887_v22, %v4507_v18  ;;  %v3237_v57 = vld [vmem:[%s4025_s22 + $0x90] sm:$0xff]  ;;  %v4840_v45 = vld [vmem:[#allocation14_spill] sm:$0xff] }
 0x2b9   : > { %v1678_v10 = vpop.f32.mrf.mxu0 }
 0x2ba   : > { %2462 = vst [vmem:[%s4517_s12 + $0x50] sm:$0xff] %v2430_v62  ;;  %v2428_v60 = vadd.f32 %v2396_v33, %v4834_v20  ;;  %v2399_v59 = vmul.f32 %v2286_v21, %v2015_v29  ;;  %v2013_v1 = vadd.f32 %v4507_v18, %v1678_v10  ;;  %v3238_v29 = vld [vmem:[%s4025_s22 + $0x80] sm:$0xff] }
 0x2bb   : > { %v2890_v38 = vpop.f32.mrf.mxu0 }
 0x2bc   : > { %2460 = vst [vmem:[%s4517_s12 + $0x40] sm:$0xff] %v2428_v60  ;;  %v2431_v2 = vadd.f32 %v2399_v59, %v4835_v50  ;;  %v2397_v55 = vmul.f32 %v4501_v12, %v2013_v1  ;;  %v2018_v49 = vadd.f32 %v2890_v38, %v4507_v18  ;;  %v3239_v1 = vld [vmem:[%s4025_s22 + $0x98] sm:$0xff] }
 0x2bd   : > { %v1691_v46 = vpop.f32.mrf.mxu0 }
 0x2be   : > { %2463 = vst [vmem:[%s4517_s12 + $0x58] sm:$0xff] %v2431_v2  ;;  %v2429_v53 = vadd.f32 %v2397_v55, %v4836_v54  ;;  %v2402_v61 = vmul.f32 %v2301_v36, %v2018_v49  ;;  %v2016_v21 = vadd.f32 %v4507_v18, %v1691_v46  ;;  %v3240_v49 = vld [vmem:[%s4025_s22 + $0x88] sm:$0xff] }
 0x2bf   : > { %v2891_v19 = vpop.f32.mrf.mxu0 }
 0x2c0   : > { %2461 = vst [vmem:[%s4517_s12 + $0x48] sm:$0xff] %v2429_v53  ;;  %v2434_v44 = vadd.f32 %v2402_v61, %v4837_v5  ;;  %v2400_v63 = vmul.f32 %v4513_v27, %v2016_v21  ;;  %v2019_v12 = vadd.f32 %v2891_v19, %v4507_v18  ;;  %v3241_v61 = vld [vmem:[%s4025_s22 + $0xb0] sm:$0xff] }
 0x2c1   : > { %v1694_v37 = vpop.f32.mrf.mxu0 }
 0x2c2   : > { %2466 = vst [vmem:[%s4517_s12 + $0x70] sm:$0xff] %v2434_v44  ;;  %v2432_v30 = vadd.f32 %v2400_v63, %v4838_v58  ;;  %v2403_v28 = vmul.f32 %v2306_v15, %v2019_v12  ;;  %v2017_v36 = vadd.f32 %v4507_v18, %v1694_v37  ;;  %v2214_v15 = vmul.f32 %v3237_v57, %v4473_v8  ;;  %v2346_v8 = vpop.permute.xlu1 %2345  ;;  %v3242_v63 = vld [vmem:[%s4025_s22 + $0xa0] sm:$0xff] }
 0x2c3   : > { %v2894_v47 = vpop.f32.mrf.mxu0  ;;  %v2216_v12 = vmul.f32 %v3242_v63, %v4477_v9  ;;  %v3244_v9 = vld [vmem:[%s4025_s22 + $0xa8] sm:$0xff]  ;;  %v3251_v63 = vld [vmem:[%s4025_s22 + $0xf8] sm:$0xff] }
 0x2c4   : > { %2464 = vst [vmem:[%s4517_s12 + $0x60] sm:$0xff] %v2432_v30  ;;  %v2435_v6 = vadd.f32 %v2403_v28, %v4839_v40  ;;  %v2401_v27 = vmul.f32 %v4522_v39, %v2017_v36  ;;  %v2022_v25 = vadd.f32 %v2894_v47, %v4507_v18  ;;  %v2212_v39 = vmul.f32 %v3238_v29, %v4469_v26  ;;  %v2351_v26 = vpop.permute.xlu0 %2350  ;;  %v3243_v28 = vld [vmem:[%s4025_s22 + $0xb8] sm:$0xff]  ;;  %v3246_v29 = vld [vmem:[%s4025_s22 + $0xc0] sm:$0xff] }
 0x2c5   : > { %v1707_v43 = vpop.f32.mrf.mxu0  ;;  %v2219_v36 = vmul.f32 %v3243_v28, %v4483_v14 }
 0x2c6   : > { %2467 = vst [vmem:[%s4517_s12 + $0x78] sm:$0xff] %v2435_v6  ;;  %v2433_v22 = vadd.f32 %v2401_v27, %v4840_v45  ;;  %v2406_v48 = vmul.f32 %v2321_v24, %v2022_v25  ;;  %v2020_v62 = vadd.f32 %v4507_v18, %v1707_v43  ;;  %v2215_v24 = vmul.f32 %v3239_v1, %v4475_v17  ;;  %v2356_v44 = vpop.permute.xlu1 %2355 }
 0x2c7   : > { %v2895_v33 = vpop.f32.mrf.mxu0  ;;  %v2217_v25 = vmul.f32 %v3244_v9, %v4479_v56 }
 0x2c8   : > { %2465 = vst [vmem:[%s4517_s12 + $0x68] sm:$0xff] %v2433_v22  ;;  %v2438_v10 = vadd.f32 %v2406_v48, %v2214_v15  ;;  %v2404_v20 = vmul.f32 %v4536_v7, %v2020_v62  ;;  %v2023_v60 = vadd.f32 %v2895_v33, %v4507_v18  ;;  %v2213_v7 = vmul.f32 %v3240_v49, %v4471_v0  ;;  %v2361_v30 = vpop.permute.xlu0 %2360  ;;  %v3245_v15 = vld [vmem:[%s4025_s22 + $0xd0] sm:$0xff] }
 0x2c9   : > { %v1710_v59 = vpop.f32.mrf.mxu0  ;;  %v2222_v45 = vmul.f32 %v3245_v15, %v4489_v31  ;;  %v3247_v31 = vld [vmem:[%s4025_s22 + $0xd8] sm:$0xff] }
 0x2ca   : > { %2470 = vst [vmem:[%s4517_s12 + $0x90] sm:$0xff] %v2438_v10  ;;  %v2436_v38 = vadd.f32 %v2404_v20, %v2212_v39  ;;  %v2407_v50 = vmul.f32 %v2326_v34, %v2023_v60  ;;  %v2021_v2 = vadd.f32 %v4507_v18, %v1710_v59  ;;  %v2218_v34 = vmul.f32 %v3241_v61, %v4481_v11  ;;  %v2366_v57 = vpop.permute.xlu1 %2365 }
 0x2cb   : > { %v2898_v55 = vpop.f32.mrf.mxu0 }
 0x2cc   : > { %2468 = vst [vmem:[%s4517_s12 + $0x80] sm:$0xff] %v2436_v38  ;;  %v2439_v46 = vadd.f32 %v2407_v50, %v2215_v24  ;;  %v2405_v54 = vmul.f32 %v4544_v51, %v2021_v2  ;;  %v2026_v53 = vadd.f32 %v2898_v55, %v4507_v18  ;;  %v2371_v56 = vpop.permute.xlu0 %2370 }
 0x2cd   : > { %v1723_v17 = vpop.f32.mrf.mxu0 }
 0x2ce   : > { %2471 = vst [vmem:[%s4517_s12 + $0x98] sm:$0xff] %v2439_v46  ;;  %v2437_v21 = vadd.f32 %v2405_v54, %v2213_v7  ;;  %v2410_v19 = vmul.f32 %v2341_v52, %v2026_v53  ;;  %v2024_v5 = vadd.f32 %v4507_v18, %v1723_v17  ;;  %v2376_v38 = vpop.permute.xlu1 %2375  ;;  %v3249_v46 = vld [vmem:[%s4025_s22 + $0xf0] sm:$0xff] }
 0x2cf   : > { %v2899_v0 = vpop.f32.mrf.mxu0  ;;  %v2226_v54 = vmul.f32 %v3249_v46, %v4497_v3 }
 0x2d0   : > { %2469 = vst [vmem:[%s4517_s12 + $0x88] sm:$0xff] %v2437_v21  ;;  %v2442_v51 = vadd.f32 %v2410_v19, %v2218_v34  ;;  %v2408_v37 = vmul.f32 %v2331_v32, %v2024_v5  ;;  %v2027_v58 = vadd.f32 %v2899_v0, %v4507_v18  ;;  %v2381_v7 = vpop.permute.xlu0 %2380  ;;  %v3250_v34 = vld [vmem:[%s4025_s22 + $0xe0] sm:$0xff] }
 0x2d1   : > { %v1726_v11 = vpop.f32.mrf.mxu0  ;;  %v2224_v21 = vmul.f32 %v3250_v34, %v4493_v35  ;;  %v3252_v35 = vld [vmem:[%s4025_s22 + $0xe8] sm:$0xff] }
 0x2d2   : > { %2474 = vst [vmem:[%s4517_s12 + $0xb0] sm:$0xff] %v2442_v51  ;;  %v2440_v47 = vadd.f32 %v2408_v37, %v2216_v12  ;;  %v2411_v40 = vmul.f32 %v2346_v8, %v2027_v58  ;;  %v2025_v6 = vadd.f32 %v4507_v18, %v1726_v11  ;;  %v2223_v8 = vmul.f32 %v3247_v31, %v4491_v23  ;;  %v2386_v3 = vpop.permute.xlu1 %2385 }
 0x2d3   : > { %v2902_v27 = vpop.f32.mrf.mxu0  ;;  %v2227_v12 = vmul.f32 %v3251_v63, %v4499_v4 }
 0x2d4   : > { %2472 = vst [vmem:[%s4517_s12 + $0xa0] sm:$0xff] %v2440_v47  ;;  %v2443_v32 = vadd.f32 %v2411_v40, %v2219_v36  ;;  %v2409_v52 = vmul.f32 %v4566_v16, %v2025_v6  ;;  %v2030_v43 = vadd.f32 %v2902_v27, %v4507_v18  ;;  %v2220_v16 = vmul.f32 %v3246_v29, %v4485_v42  ;;  %v3248_v42 = vld [vmem:[%s4025_s22 + $0xc8] sm:$0xff]  ;;  %s3331_s22 = scalar_lea.vmem %s4646_s26, 4096 }
 0x2d5   : > { %v1739_v14 = vpop.f32.mrf.mxu0  ;;  %v2221_v2 = vmul.f32 %v3248_v42, %v4487_v13  ;;  %p3332_p10 = scmp.ne.s32.totalorder %s4646_s26, %s3331_s22  ;;  %p3339_p6 = scmp.lt.s32.totalorder %s3337_s25, %s3331_s22 }
 0x2d6   : > { %2475 = vst [vmem:[%s4517_s12 + $0xb8] sm:$0xff] %v2443_v32  ;;  %v2441_v22 = vadd.f32 %v2409_v52, %v2217_v25  ;;  %v2414_v48 = vmul.f32 %v2361_v30, %v2030_v43  ;;  %v2028_v62 = vadd.f32 %v4507_v18, %v1739_v14  ;;  %v2225_v30 = vmul.f32 %v3252_v35, %v4495_v41 }
 0x2d7   : > { %v2903_v33 = vpop.f32.mrf.mxu0  ;;  %p3333_p11 = pnand %p3332_p10, %p3511_p4  ;;  %p3340_p7 = por %p3339_p6, %p3338_p3 }
 0x2d8   : > { %2473 = vst [vmem:[%s4517_s12 + $0xa8] sm:$0xff] %v2441_v22  ;;  %v2446_v39 = vadd.f32 %v2414_v48, %v2222_v45  ;;  %v2412_v10 = vmul.f32 %v2351_v26, %v2028_v62  ;;  %v2031_v20 = vadd.f32 %v2903_v33, %v4507_v18 }
 0x2d9   : > { %v1742_v60 = vpop.f32.mrf.mxu0  ;;  %p3334_p0 = pneg %p3333_p11 }
 0x2da   : > { %2478 = vst [vmem:[%s4517_s12 + $0xd0] sm:$0xff] %v2446_v39  ;;  %v2444_v59 = vadd.f32 %v2412_v10, %v2220_v16  ;;  %v2415_v1 = vmul.f32 %v2366_v57, %v2031_v20  ;;  %v2029_v24 = vadd.f32 %v4507_v18, %v1742_v60 }
 0x2db   : > { %v2906_v50 = vpop.f32.mrf.mxu0  ;;  %p3341_p9 = pnand %p3340_p7, %p3334_p0 }
 0x2dc   : > { %2476 = vst [vmem:[%s4517_s12 + $0xc0] sm:$0xff] %v2444_v59  ;;  %v2447_v26 = vadd.f32 %v2415_v1, %v2223_v8  ;;  %v2413_v55 = vmul.f32 %v2356_v44, %v2029_v24  ;;  %v2034_v49 = vadd.f32 %v2906_v50, %v4507_v18 }
 0x2dd   : > { %v1755_v23 = vpop.f32.mrf.mxu0 }
 0x2de   : > { %2479 = vst [vmem:[%s4517_s12 + $0xd8] sm:$0xff] %v2447_v26  ;;  %v2445_v53 = vadd.f32 %v2413_v55, %v2221_v2  ;;  %v2418_v17 = vmul.f32 %v2381_v7, %v2034_v49  ;;  %v2032_v61 = vadd.f32 %v4507_v18, %v1755_v23 }
 0x2df   : > { %v2907_v13 = vpop.f32.mrf.mxu0 }
 0x2e0   : > { %2477 = vst [vmem:[%s4517_s12 + $0xc8] sm:$0xff] %v2445_v53  ;;  %v2450_v19 = vadd.f32 %v2418_v17, %v2226_v54  ;;  %v2416_v5 = vmul.f32 %v2371_v56, %v2032_v61  ;;  %v2035_v44 = vadd.f32 %v2907_v13, %v4507_v18 }
 0x2e1   : > { %v1758_v0 = vpop.f32.mrf.mxu0 }
 0x2e2   : > { %2482 = vst [vmem:[%s4517_s12 + $0xf0] sm:$0xff] %v2450_v19  ;;  %v2448_v51 = vadd.f32 %v2416_v5, %v2224_v21  ;;  %v2419_v37 = vmul.f32 %v2386_v3, %v2035_v44  ;;  %v2033_v58 = vadd.f32 %v4507_v18, %v1758_v0 }
 0x2e4   : > { %2480 = vst [vmem:[%s4517_s12 + $0xe0] sm:$0xff] %v2448_v51  ;;  %v2451_v11 = vadd.f32 %v2419_v37, %v2227_v12  ;;  %v2417_v28 = vmul.f32 %v2376_v38, %v2033_v58 }
 0x2e6   : > { %2483 = vst [vmem:[%s4517_s12 + $0xf8] sm:$0xff] %v2451_v11  ;;  %v2449_v4 = vadd.f32 %v2417_v28, %v2225_v30 }
 0x2e8   : > { %2481 = vst [vmem:[%s4517_s12 + $0xe8] sm:$0xff] %v2449_v4 }
 0x2e9   : > { %3344 = shalt.err (!%p3341_p9)
}
 0x2ea   : > { %s3345_s23 = scalar_lea.hbm %s4644_s21, 4096  ;;  %s3349_s20 = scalar_lea.hbm %s4705_s8, 8192 }
 0x2eb   : > { %p3346_p12 = scmp.ne.s32.totalorder %s4644_s21, %s3345_s23  ;;  %p3350_p2 = scmp.lt.s32.totalorder %s4644_s21, %s4705_s8 }
 0x2ec   : > { %p3351_p5 = scmp.lt.s32.totalorder %s3349_s20, %s3345_s23 }
 0x2ed   : > { %p3347_p1 = pnand %p3346_p12, %p3511_p4 }
 0x2ee   : > { %p3352_p13 = por %p3351_p5, %p3350_p2 }
 0x2ef   : > { %p3348_p8 = pneg %p3347_p1 }
 0x2f1   : > { %p3353_p10 = pnand %p3352_p13, %p3348_p8 }
 0x2f3   : > { %3356 = shalt.err (!%p3353_p10)
}
 0x2f4   : > { %s3424_s22 = smov 128   ;;  %s3425_s24 = smov 8  }
 0x2f5   : > { %2936 = dma.vmem_to_hbm [thread:$0]  (%p3511_p4), %s4646_s26, 4096, %s4644_s21, %s4652_s30, %s3424_s22, %s3424_s22, %s3425_s24  }
 0x2f6 PF: > { %p2958_p11 = scmp.ge.s32.totalorder %s3415_s10, 2  ;;  %s2513_s19 = sand.u32 1, %s3395_s27  }
 0x2f7   : > { %p4841_p0 = scmp.ne.s32.totalorder %s4735_s17, 0  ;;  %s2514_s25 = scalar_lea.sflag [#allocation5], %s2513_s19 }
 0x2f9   : > { %p2949_p3 = pnand %p2958_p11, %p4841_p0 }
 0x2fb   : > { %p2950_p6 = pneg %p2949_p3 }
 0x2fd   : > { %3390 = dma.done.wait (%p2950_p6), %s2514_s25, 4096  }
 0x2fe   : > { %3392 = vsyncadd (%p2950_p6), %s2514_s25, 4294963200  ;;  %s23_s10 = sadd.s32 1, %s3415_s10   ;;  %s4842_s27 = smov %s3399_s28 }
 0x2ff   : > { %p20_p7 = scmp.ge.s32.totalorder %s23_s10, 4   ;;  %s4843_s28 = smov %s3403_s29 }
 0x300   : > { %s4844_s29 = smov %s3524_s18  ;;  %s4845_s30 = smov %s3411_s9 }
 0x301   : > { %s4846_s9 = smov %s4848_s13  ;;  %22 = sbr.rel (!%p20_p7) target bundleno = 6 (0x6), region = 120 }
 0x306   :  { %2519 = vsyncpa [#allocation4], 1 }
 0x307   :  { %2521 = vsyncpa [#allocation4 + $0x1], 1 }
 0x308   :  { %2522 = vsyncpa [#allocation7], 1 }
 0x309   :  { %2523 = vsyncpa [#allocation5], 1 }
 0x30a   :  { %2525 = vsyncpa [#allocation5 + $0x1], 1 }

</bundles_post_ra>
